<compile_context>
chip_gen: v7x
topology: tpu7x:2x2x1
jax: 0.10.0
libtpu: 0.0.40
codegen_flags: <defaults>
</compile_context>

<pallas_src>
import functools

import jax
import jax.numpy as jnp
from jax.experimental import pallas as pl
from jax.experimental.pallas import tpu as pltpu

_HIGHEST = jax.lax.Precision.HIGHEST  # only for one-time trace-time weight folds


def _round_up(x, m):
    return (x + m - 1) // m * m


def _pad_gate_cols(w, h, hp):
    """Pad the last dim (= 4*h, gate blocks i|f|g|o) blockwise to 4*hp with zeros."""
    if hp == h:
        return w
    pads = [(0, 0)] * (w.ndim - 1) + [(0, hp - h)]
    parts = [jnp.pad(w[..., k * h:(k + 1) * h], pads) for k in range(4)]
    return jnp.concatenate(parts, axis=-1)


def _pad_rows(w, h, hp):
    if hp == h:
        return w
    return jnp.pad(w, [(0, hp - h)] + [(0, 0)] * (w.ndim - 1))


# ---------------------------------------------------------------------------
# Fused encoder + decoder kernel (single invocation, time loops internal).
# ---------------------------------------------------------------------------
def seq2seq_kernel(src_ref,
                   enc_wx_ref, enc_whh_ref, enc_b_ref,
                   dec_wx_ref, dec_whh_ref, dec_b_ref,
                   dec_wrec_ref, dec_brec_ref,
                   w_fc_ref, b_fc_ref,
                   out_ref,
                   xp_ref, hdec_ref,
                   *, hid_dim, src_len, max_len, enc_unroll, dec_unroll):
    B = src_ref.shape[1]
    H = hid_dim  # padded hidden dim (multiple of 128)
    f32 = jnp.float32
    bf16 = jnp.bfloat16

    def mxu(a, w_ref):
        # bf16 operands on the MXU, f32 accumulation.
        return jnp.dot(a.astype(bf16), w_ref[...], preferred_element_type=f32)

    def cell(gates, c_prev):
        # PyTorch LSTM gate order (i, f, g, o); slices are 128-lane aligned.
        i = jax.nn.sigmoid(gates[:, 0 * H:1 * H])
        f = jax.nn.sigmoid(gates[:, 1 * H:2 * H])
        g = jnp.tanh(gates[:, 2 * H:3 * H])
        o = jax.nn.sigmoid(gates[:, 3 * H:4 * H])
        c = f * c_prev + i * g
        h = o * jnp.tanh(c)
        return h, c

    # ---- bulk input projections, hoisted off the serial recurrences --------
    # encoder: one MXU-shaped (T*B, I) @ (I, 4H) matmul (instead of T tiny ones)
    src2d = src_ref[...].reshape(src_len * B, src_ref.shape[2])
    xp = mxu(src2d, enc_wx_ref) + enc_b_ref[...]
    xp_ref[pl.ds(0, src_len)] = xp.reshape(src_len, B, 4 * H)
    # decoder t=0 input projection (seeded with src[-1]); stored at slot src_len
    xp_ref[src_len] = mxu(src_ref[src_len - 1], dec_wx_ref) + dec_b_ref[...]

    # ---- encoder recurrence; t=0 peeled (h0 == 0 => skip h @ W_hh) ----------
    c0 = jnp.zeros((B, H), f32)
    h, c = cell(xp_ref[0], c0)

    def enc_step(t, carry):
        h, c = carry
        gates = xp_ref[t] + mxu(h, enc_whh_ref)
        return cell(gates, c)

    h, c = jax.lax.fori_loop(1, src_len, enc_step, (h, c), unroll=enc_unroll)

    # ---- decoder t = 0 (input projection precomputed above) ----------------
    gates = xp_ref[src_len] + mxu(h, dec_whh_ref)
    h, c = cell(gates, c)
    hdec_ref[0] = h.astype(hdec_ref.dtype)

    # ---- decoder t >= 1: folded recurrence, fc projection deferred ---------
    def dec_step(t, carry):
        h, c = carry
        gates = mxu(h, dec_wrec_ref) + dec_brec_ref[...]
        h, c = cell(gates, c)
        hdec_ref[t] = h.astype(hdec_ref.dtype)   # lane-dense (width Hp) store
        return h, c

    jax.lax.fori_loop(1, max_len, dec_step, (h, c), unroll=dec_unroll)

    # ---- deferred output projection: one bulk matmul + single store --------
    hs = hdec_ref[...].reshape(max_len * B, H)
    y = jnp.dot(hs, w_fc_ref[...], preferred_element_type=f32) + b_fc_ref[...]
    out_ref[...] = y.reshape(max_len, B, out_ref.shape[2])


# ---------------------------------------------------------------------------
# Wrapper: trace-time weight folding + padding + single pallas_call.
# ---------------------------------------------------------------------------
def seq2seq_lstm_forward(src, params, max_len, *, batch_block=None):
    T, B, input_dim = src.shape
    H = params["enc_w_hh"].shape[0]
    O = params["dec_w_fc"].shape[1]
    f32, bf16 = jnp.float32, jnp.bfloat16

    assert input_dim == O, (
        "decoder is seeded with src[-1]; requires input_dim == output_dim")

    dot = lambda a, b: jnp.dot(a, b, precision=_HIGHEST)  # one-time folds only

    # Fold the embedding Linears into the LSTM input weights; fold the decoder
    # fc -> emb -> ih chain into a single recurrent matrix for t >= 1.
    enc_wx = dot(params["enc_w_emb"], params["enc_w_ih"])
    enc_b = dot(params["enc_b_emb"], params["enc_w_ih"]) + params["enc_b"]
    dec_wx = dot(params["dec_w_emb"], params["dec_w_ih"])
    dec_b = dot(params["dec_b_emb"], params["dec_w_ih"]) + params["dec_b"]
    dec_wrec = dot(params["dec_w_fc"], dec_wx) + params["dec_w_hh"]
    dec_brec = dot(params["dec_b_fc"], dec_wx) + dec_b

    # Pad hidden dim gate-blockwise to a 128-lane multiple (padded h/c stay 0).
    Hp = _round_up(H, 128)
    enc_wx = _pad_gate_cols(enc_wx, H, Hp)
    enc_whh = _pad_gate_cols(_pad_rows(params["enc_w_hh"], H, Hp), H, Hp)
    enc_b = _pad_gate_cols(enc_b, H, Hp)
    dec_wx = _pad_gate_cols(dec_wx, H, Hp)
    dec_whh = _pad_gate_cols(_pad_rows(params["dec_w_hh"], H, Hp), H, Hp)
    dec_b = _pad_gate_cols(dec_b, H, Hp)
    dec_wrec = _pad_gate_cols(_pad_rows(dec_wrec, H, Hp), H, Hp)
    dec_brec = _pad_gate_cols(dec_brec, H, Hp)
    w_fc = _pad_rows(params["dec_w_fc"], H, Hp)
    b_fc = params["dec_b_fc"].astype(f32)

    # bf16 weights for the MXU (f32 accumulation in-kernel); biases stay f32.
    enc_wx, enc_whh, dec_wx, dec_whh, dec_wrec, w_fc = (
        w.astype(bf16) for w in (enc_wx, enc_whh, dec_wx, dec_whh, dec_wrec, w_fc))
    enc_b, dec_b, dec_brec = (b.astype(f32) for b in (enc_b, dec_b, dec_brec))

    # Pad batch to a sublane multiple; grid over batch blocks ("parallel" so
    # v7x can shard the two TensorCores for large batches).
    pB = _round_up(max(B, 8), 8)
    src_p = jnp.pad(src.astype(f32), ((0, 0), (0, pB - B), (0, 0)))
    if batch_block is None:
        batch_block = pB
    assert pB % batch_block == 0 and batch_block % 8 == 0
    nb = pB // batch_block

    enc_unroll = max(1, min(8, T - 1))
    dec_unroll = max(1, min(8, max_len - 1))

    kernel = functools.partial(
        seq2seq_kernel, hid_dim=Hp, src_len=T, max_len=max_len,
        enc_unroll=enc_unroll, dec_unroll=dec_unroll)

    whole = pl.BlockSpec(memory_space=pltpu.MemorySpace.VMEM)  # resident weights
    scratch_shapes = [
        pltpu.VMEM((T + 1, batch_block, 4 * Hp), f32),   # hoisted input projections
        pltpu.VMEM((max_len, batch_block, Hp), bf16),    # decoder hidden states
    ]

    # Explicit scoped-VMEM budget: resident weights + src/out blocks + scratch.
    weight_bytes = sum(int(a.size) * a.dtype.itemsize for a in
                       (enc_wx, enc_whh, enc_b, dec_wx, dec_whh, dec_b,
                        dec_wrec, dec_brec, w_fc, b_fc))
    block_bytes = (T * batch_block * input_dim * 4
                   + max_len * batch_block * O * 4
                   + (T + 1) * batch_block * 4 * Hp * 4
                   + max_len * batch_block * Hp * 2)
    vmem_limit = int(min(64 * 2 ** 20,
                         max(16 * 2 ** 20, 2 * (weight_bytes + block_bytes))))

    call = pl.pallas_call(
        kernel,
        out_shape=jax.ShapeDtypeStruct((max_len, pB, O), f32),
        grid_spec=pltpu.PrefetchScalarGridSpec(
            num_scalar_prefetch=0,
            grid=(nb,),
            in_specs=[pl.BlockSpec((T, batch_block, input_dim),
                                   lambda b: (0, b, 0))] + [whole] * 10,
            out_specs=pl.BlockSpec((max_len, batch_block, O),
                                   lambda b: (0, b, 0)),
            scratch_shapes=scratch_shapes),
        compiler_params=pltpu.CompilerParams(
            dimension_semantics=("parallel",),
            vmem_limit_bytes=vmem_limit),
    )
    out = call(src_p, enc_wx, enc_whh, enc_b, dec_wx, dec_whh, dec_b,
               dec_wrec, dec_brec, w_fc, b_fc)
    return out[:, :B, :]


# ---------------------------------------------------------------------------
# Pure-JAX reference (faithful, un-folded, per-step, f32) for correctness.
# ---------------------------------------------------------------------------
def reference_forward(src, params, max_len):
    hid_dim = params["enc_w_hh"].shape[0]
    B = src.shape[1]

    def dot(a, b):
        return jnp.dot(a, b, precision=_HIGHEST)

    def lstm_step(h, c, emb, w_ih, w_hh, b):
        gates = dot(emb, w_ih) + dot(h, w_hh) + b
        i = jax.nn.sigmoid(gates[:, 0 * hid_dim:1 * hid_dim])
        f = jax.nn.sigmoid(gates[:, 1 * hid_dim:2 * hid_dim])
        g = jnp.tanh(gates[:, 2 * hid_dim:3 * hid_dim])
        o = jax.nn.sigmoid(gates[:, 3 * hid_dim:4 * hid_dim])
        c = f * c + i * g
        h = o * jnp.tanh(c)
        return h, c

    h = jnp.zeros((B, hid_dim), jnp.float32)
    c = jnp.zeros((B, hid_dim), jnp.float32)
    for t in range(src.shape[0]):
        emb = dot(src[t], params["enc_w_emb"]) + params["enc_b_emb"]
        h, c = lstm_step(h, c, emb, params["enc_w_ih"], params["enc_w_hh"],
                         params["enc_b"])
    y = src[-1]
    outs = []
    for _ in range(max_len):
        emb = dot(y, params["dec_w_emb"]) + params["dec_b_emb"]
        h, c = lstm_step(h, c, emb, params["dec_w_ih"], params["dec_w_hh"],
                         params["dec_b"])
        y = dot(h, params["dec_w_fc"]) + params["dec_b_fc"]
        outs.append(y)
    return jnp.stack(outs, axis=0)


# ---------------------------------------------------------------------------
# Deterministic parameter init + demo run
# ---------------------------------------------------------------------------
def make_params(key, input_dim, emb_dim, hid_dim, output_dim):
    ks = jax.random.split(key, 10)
    s = 0.1

    def rnd(k, shape):
        return s * jax.random.normal(k, shape, dtype=jnp.float32)

    return {
        # encoder
        "enc_w_emb": rnd(ks[0], (input_dim, emb_dim)),
        "enc_b_emb": rnd(ks[1], (1, emb_dim)),
        "enc_w_ih": rnd(ks[2], (emb_dim, 4 * hid_dim)),
        "enc_w_hh": rnd(ks[3], (hid_dim, 4 * hid_dim)),
        "enc_b": rnd(ks[4], (1, 4 * hid_dim)),        # = b_ih + b_hh combined
        # decoder
        "dec_w_emb": rnd(ks[5], (output_dim, emb_dim)),
        "dec_b_emb": rnd(ks[6], (1, emb_dim)),
        "dec_w_ih": rnd(ks[7], (emb_dim, 4 * hid_dim)),
        "dec_w_hh": rnd(ks[8], (hid_dim, 4 * hid_dim)),
        "dec_b": rnd(ks[9], (1, 4 * hid_dim)),
        # decoder fc_out
        "dec_w_fc": rnd(jax.random.fold_in(key, 100), (hid_dim, output_dim)),
        "dec_b_fc": rnd(jax.random.fold_in(key, 101), (1, output_dim)),
    }


if __name__ == "__main__":
    # Small shapes consistent with the module (input_dim must equal output_dim
    # because the decoder is seeded with src[-1]).
    input_dim = output_dim = 8
    emb_dim = 16
    hid_dim = 32
    src_len = 6
    max_len = 5
    batch = 4

    key = jax.random.PRNGKey(0)
    k_src, k_par = jax.random.split(key)
    src = jax.random.normal(k_src, (src_len, batch, input_dim), dtype=jnp.float32)
    params = make_params(k_par, input_dim, emb_dim, hid_dim, output_dim)

    out = seq2seq_lstm_forward(src, params, max_len)
    out = jax.block_until_ready(out)

    ref = reference_forward(src, params, max_len)
    assert out.shape == (max_len, batch, output_dim), out.shape
    # bf16 MXU operands (f32 accumulate) => looser tolerance than pure f32.
    assert jnp.allclose(out, ref, atol=2e-2, rtol=2e-2), (
        float(jnp.max(jnp.abs(out - ref))))

    print("KERNEL_OK")
</pallas_src>

<mosaic_0001>
module attributes {stable_mosaic.version = 11 : i64} {
  func.func @seq2seq_kernel(%arg0: i32, %arg1: memref<6x8x8xf32, #tpu.memory_space<vmem>>, %arg2: memref<8x512xbf16, #tpu.memory_space<vmem>>, %arg3: memref<128x512xbf16, #tpu.memory_space<vmem>>, %arg4: memref<1x512xf32, #tpu.memory_space<vmem>>, %arg5: memref<8x512xbf16, #tpu.memory_space<vmem>>, %arg6: memref<128x512xbf16, #tpu.memory_space<vmem>>, %arg7: memref<1x512xf32, #tpu.memory_space<vmem>>, %arg8: memref<128x512xbf16, #tpu.memory_space<vmem>>, %arg9: memref<1x512xf32, #tpu.memory_space<vmem>>, %arg10: memref<128x8xbf16, #tpu.memory_space<vmem>>, %arg11: memref<1x8xf32, #tpu.memory_space<vmem>>, %arg12: memref<5x8x8xf32, #tpu.memory_space<vmem>>, %arg13: memref<7x8x512xf32, #tpu.memory_space<vmem>>, %arg14: memref<5x8x128xbf16, #tpu.memory_space<vmem>>) attributes {dimension_semantics = [#tpu.dimension_semantics<parallel>], iteration_bounds = array<i64: 1>, scalar_prefetch = 0 : i64, scratch_operands = 2 : i64, tpu.core_type = #tpu.core_type<tc>, window_params = [{transform_indices = @transform_0, window_bounds = array<i64: 6, 8, 8>}, {pipeline_mode = #tpu.pipeline_mode<synchronous>, transform_indices = @transform_1, window_bounds = array<i64: 8, 512>}, {pipeline_mode = #tpu.pipeline_mode<synchronous>, transform_indices = @transform_2, window_bounds = array<i64: 128, 512>}, {pipeline_mode = #tpu.pipeline_mode<synchronous>, transform_indices = @transform_3, window_bounds = array<i64: 1, 512>}, {pipeline_mode = #tpu.pipeline_mode<synchronous>, transform_indices = @transform_4, window_bounds = array<i64: 8, 512>}, {pipeline_mode = #tpu.pipeline_mode<synchronous>, transform_indices = @transform_5, window_bounds = array<i64: 128, 512>}, {pipeline_mode = #tpu.pipeline_mode<synchronous>, transform_indices = @transform_6, window_bounds = array<i64: 1, 512>}, {pipeline_mode = #tpu.pipeline_mode<synchronous>, transform_indices = @transform_7, window_bounds = array<i64: 128, 512>}, {pipeline_mode = #tpu.pipeline_mode<synchronous>, transform_indices = @transform_8, window_bounds = array<i64: 1, 512>}, {pipeline_mode = #tpu.pipeline_mode<synchronous>, transform_indices = @transform_9, window_bounds = array<i64: 128, 8>}, {pipeline_mode = #tpu.pipeline_mode<synchronous>, transform_indices = @transform_10, window_bounds = array<i64: 1, 8>}, {transform_indices = @transform_11, window_bounds = array<i64: 5, 8, 8>}]} {
    %c0 = arith.constant 0 : index
    %c0_0 = arith.constant 0 : index
    %c0_1 = arith.constant 0 : index
    %0 = vector.load %arg1[%c0, %c0_0, %c0_1] : memref<6x8x8xf32, #tpu.memory_space<vmem>>, vector<6x8x8xf32>
    %1 = vector.shape_cast %0 : vector<6x8x8xf32> to vector<48x8xf32>
    %2 = arith.truncf %1 : vector<48x8xf32> to vector<48x8xbf16>
    %c0_2 = arith.constant 0 : index
    %c0_3 = arith.constant 0 : index
    %3 = vector.load %arg2[%c0_2, %c0_3] : memref<8x512xbf16, #tpu.memory_space<vmem>>, vector<8x512xbf16>
    %cst = arith.constant dense<0.000000e+00> : vector<48x512xf32>
    %4 = tpu.matmul %2, %3, %cst {dimension_numbers = #tpu.dot_dimension_numbers<[1], [0], [0], [1], [0, 0, 1, 1], [], []>} : vector<48x8xbf16>, vector<8x512xbf16>, vector<48x512xf32> -> vector<48x512xf32>
    %c0_4 = arith.constant 0 : index
    %c0_5 = arith.constant 0 : index
    %5 = vector.load %arg4[%c0_4, %c0_5] : memref<1x512xf32, #tpu.memory_space<vmem>>, vector<1x512xf32>
    %6 = vector.broadcast %5 : vector<1x512xf32> to vector<48x512xf32>
    %7 = arith.addf %4, %6 : vector<48x512xf32>
    %8 = vector.shape_cast %7 : vector<48x512xf32> to vector<6x8x512xf32>
    %c0_6 = arith.constant 0 : index
    %c0_7 = arith.constant 0 : index
    %c0_8 = arith.constant 0 : index
    %9 = vector.load %arg13[%c0_6, %c0_7, %c0_8] : memref<7x8x512xf32, #tpu.memory_space<vmem>>, vector<6x8x512xf32>
    tpu.vector_store %arg13[%c0_6, %c0_7, %c0_8], %8 {strides = array<i32>} : memref<7x8x512xf32, #tpu.memory_space<vmem>>, vector<6x8x512xf32>,
    %c5 = arith.constant 5 : index
    %c0_9 = arith.constant 0 : index
    %c0_10 = arith.constant 0 : index
    %10 = vector.load %arg1[%c5, %c0_9, %c0_10] : memref<6x8x8xf32, #tpu.memory_space<vmem>>, vector<1x8x8xf32>
    %11 = vector.shape_cast %10 : vector<1x8x8xf32> to vector<8x8xf32>
    %12 = arith.truncf %11 : vector<8x8xf32> to vector<8x8xbf16>
    %c0_11 = arith.constant 0 : index
    %c0_12 = arith.constant 0 : index
    %13 = vector.load %arg5[%c0_11, %c0_12] : memref<8x512xbf16, #tpu.memory_space<vmem>>, vector<8x512xbf16>
    %cst_13 = arith.constant dense<0.000000e+00> : vector<8x512xf32>
    %14 = tpu.matmul %12, %13, %cst_13 {dimension_numbers = #tpu.dot_dimension_numbers<[1], [0], [0], [1], [0, 0, 1, 1], [], []>} : vector<8x8xbf16>, vector<8x512xbf16>, vector<8x512xf32> -> vector<8x512xf32>
    %c0_14 = arith.constant 0 : index
    %c0_15 = arith.constant 0 : index
    %15 = vector.load %arg7[%c0_14, %c0_15] : memref<1x512xf32, #tpu.memory_space<vmem>>, vector<1x512xf32>
    %16 = vector.broadcast %15 : vector<1x512xf32> to vector<8x512xf32>
    %17 = arith.addf %14, %16 : vector<8x512xf32>
    %c6 = arith.constant 6 : index
    %c0_16 = arith.constant 0 : index
    %c0_17 = arith.constant 0 : index
    %18 = vector.load %arg13[%c6, %c0_16, %c0_17] : memref<7x8x512xf32, #tpu.memory_space<vmem>>, vector<1x8x512xf32>
    %19 = vector.shape_cast %18 : vector<1x8x512xf32> to vector<8x512xf32>
    %20 = vector.shape_cast %17 : vector<8x512xf32> to vector<1x8x512xf32>
    tpu.vector_store %arg13[%c6, %c0_16, %c0_17], %20 {strides = array<i32>} : memref<7x8x512xf32, #tpu.memory_space<vmem>>, vector<1x8x512xf32>,
    %cst_18 = arith.constant 0.000000e+00 : f32
    %21 = vector.broadcast %cst_18 : f32 to vector<8x128xf32>
    %c0_19 = arith.constant 0 : index
    %c0_20 = arith.constant 0 : index
    %c0_21 = arith.constant 0 : index
    %22 = vector.load %arg13[%c0_19, %c0_20, %c0_21] : memref<7x8x512xf32, #tpu.memory_space<vmem>>, vector<1x8x512xf32>
    %23 = vector.shape_cast %22 : vector<1x8x512xf32> to vector<8x512xf32>
    %24 = vector.extract_strided_slice %23 {offsets = [0, 0], sizes = [8, 128], strides = [1, 1]} : vector<8x512xf32> to vector<8x128xf32>
    %25 = arith.negf %24 : vector<8x128xf32>
    %26 = math.exp %25 : vector<8x128xf32>
    %cst_22 = arith.constant 1.000000e+00 : f32
    %27 = vector.broadcast %cst_22 : f32 to vector<8x128xf32>
    %28 = arith.addf %27, %26 : vector<8x128xf32>
    %29 = arith.divf %27, %28 : vector<8x128xf32>
    %30 = vector.extract_strided_slice %23 {offsets = [0, 128], sizes = [8, 128], strides = [1, 1]} : vector<8x512xf32> to vector<8x128xf32>
    %31 = arith.negf %30 : vector<8x128xf32>
    %32 = math.exp %31 : vector<8x128xf32>
    %cst_23 = arith.constant 1.000000e+00 : f32
    %33 = vector.broadcast %cst_23 : f32 to vector<8x128xf32>
    %34 = arith.addf %33, %32 : vector<8x128xf32>
    %35 = arith.divf %33, %34 : vector<8x128xf32>
    %36 = vector.extract_strided_slice %23 {offsets = [0, 256], sizes = [8, 128], strides = [1, 1]} : vector<8x512xf32> to vector<8x128xf32>
    %37 = math.tanh %36 : vector<8x128xf32>
    %38 = vector.extract_strided_slice %23 {offsets = [0, 384], sizes = [8, 128], strides = [1, 1]} : vector<8x512xf32> to vector<8x128xf32>
    %39 = arith.negf %38 : vector<8x128xf32>
    %40 = math.exp %39 : vector<8x128xf32>
    %cst_24 = arith.constant 1.000000e+00 : f32
    %41 = vector.broadcast %cst_24 : f32 to vector<8x128xf32>
    %42 = arith.addf %41, %40 : vector<8x128xf32>
    %43 = arith.divf %41, %42 : vector<8x128xf32>
    %44 = arith.mulf %35, %21 : vector<8x128xf32>
    %45 = arith.mulf %29, %37 : vector<8x128xf32>
    %46 = arith.addf %44, %45 : vector<8x128xf32>
    %47 = math.tanh %46 : vector<8x128xf32>
    %48 = arith.mulf %43, %47 : vector<8x128xf32>
    %c1_i32 = arith.constant 1 : i32
    %49 = arith.index_cast %c1_i32 : i32 to index
    %c0_25 = arith.constant 0 : index
    %c0_26 = arith.constant 0 : index
    %50 = vector.load %arg13[%49, %c0_25, %c0_26] : memref<7x8x512xf32, #tpu.memory_space<vmem>>, vector<1x8x512xf32>
    %51 = vector.shape_cast %50 : vector<1x8x512xf32> to vector<8x512xf32>
    %52 = arith.truncf %48 : vector<8x128xf32> to vector<8x128xbf16>
    %c0_27 = arith.constant 0 : index
    %c0_28 = arith.constant 0 : index
    %53 = vector.load %arg3[%c0_27, %c0_28] : memref<128x512xbf16, #tpu.memory_space<vmem>>, vector<128x512xbf16>
    %cst_29 = arith.constant dense<0.000000e+00> : vector<8x512xf32>
    %54 = tpu.matmul %52, %53, %cst_29 {dimension_numbers = #tpu.dot_dimension_numbers<[1], [0], [0], [1], [0, 0, 1, 1], [], []>} : vector<8x128xbf16>, vector<128x512xbf16>, vector<8x512xf32> -> vector<8x512xf32>
    %55 = arith.addf %51, %54 : vector<8x512xf32>
    %56 = vector.extract_strided_slice %55 {offsets = [0, 0], sizes = [8, 128], strides = [1, 1]} : vector<8x512xf32> to vector<8x128xf32>
    %57 = arith.negf %56 : vector<8x128xf32>
    %58 = math.exp %57 : vector<8x128xf32>
    %cst_30 = arith.constant 1.000000e+00 : f32
    %59 = vector.broadcast %cst_30 : f32 to vector<8x128xf32>
    %60 = arith.addf %59, %58 : vector<8x128xf32>
    %61 = arith.divf %59, %60 : vector<8x128xf32>
    %62 = vector.extract_strided_slice %55 {offsets = [0, 128], sizes = [8, 128], strides = [1, 1]} : vector<8x512xf32> to vector<8x128xf32>
    %63 = arith.negf %62 : vector<8x128xf32>
    %64 = math.exp %63 : vector<8x128xf32>
    %cst_31 = arith.constant 1.000000e+00 : f32
    %65 = vector.broadcast %cst_31 : f32 to vector<8x128xf32>
    %66 = arith.addf %65, %64 : vector<8x128xf32>
    %67 = arith.divf %65, %66 : vector<8x128xf32>
    %68 = vector.extract_strided_slice %55 {offsets = [0, 256], sizes = [8, 128], strides = [1, 1]} : vector<8x512xf32> to vector<8x128xf32>
    %69 = math.tanh %68 : vector<8x128xf32>
    %70 = vector.extract_strided_slice %55 {offsets = [0, 384], sizes = [8, 128], strides = [1, 1]} : vector<8x512xf32> to vector<8x128xf32>
    %71 = arith.negf %70 : vector<8x128xf32>
    %72 = math.exp %71 : vector<8x128xf32>
    %cst_32 = arith.constant 1.000000e+00 : f32
    %73 = vector.broadcast %cst_32 : f32 to vector<8x128xf32>
    %74 = arith.addf %73, %72 : vector<8x128xf32>
    %75 = arith.divf %73, %74 : vector<8x128xf32>
    %76 = arith.mulf %67, %46 : vector<8x128xf32>
    %77 = arith.mulf %61, %69 : vector<8x128xf32>
    %78 = arith.addf %76, %77 : vector<8x128xf32>
    %79 = math.tanh %78 : vector<8x128xf32>
    %80 = arith.mulf %75, %79 : vector<8x128xf32>
    %c2_i32 = arith.constant 2 : i32
    %81 = arith.index_cast %c2_i32 : i32 to index
    %c0_33 = arith.constant 0 : index
    %c0_34 = arith.constant 0 : index
    %82 = vector.load %arg13[%81, %c0_33, %c0_34] : memref<7x8x512xf32, #tpu.memory_space<vmem>>, vector<1x8x512xf32>
    %83 = vector.shape_cast %82 : vector<1x8x512xf32> to vector<8x512xf32>
    %84 = arith.truncf %80 : vector<8x128xf32> to vector<8x128xbf16>
    %c0_35 = arith.constant 0 : index
    %c0_36 = arith.constant 0 : index
    %85 = vector.load %arg3[%c0_35, %c0_36] : memref<128x512xbf16, #tpu.memory_space<vmem>>, vector<128x512xbf16>
    %cst_37 = arith.constant dense<0.000000e+00> : vector<8x512xf32>
    %86 = tpu.matmul %84, %85, %cst_37 {dimension_numbers = #tpu.dot_dimension_numbers<[1], [0], [0], [1], [0, 0, 1, 1], [], []>} : vector<8x128xbf16>, vector<128x512xbf16>, vector<8x512xf32> -> vector<8x512xf32>
    %87 = arith.addf %83, %86 : vector<8x512xf32>
    %88 = vector.extract_strided_slice %87 {offsets = [0, 0], sizes = [8, 128], strides = [1, 1]} : vector<8x512xf32> to vector<8x128xf32>
    %89 = arith.negf %88 : vector<8x128xf32>
    %90 = math.exp %89 : vector<8x128xf32>
    %cst_38 = arith.constant 1.000000e+00 : f32
    %91 = vector.broadcast %cst_38 : f32 to vector<8x128xf32>
    %92 = arith.addf %91, %90 : vector<8x128xf32>
    %93 = arith.divf %91, %92 : vector<8x128xf32>
    %94 = vector.extract_strided_slice %87 {offsets = [0, 128], sizes = [8, 128], strides = [1, 1]} : vector<8x512xf32> to vector<8x128xf32>
    %95 = arith.negf %94 : vector<8x128xf32>
    %96 = math.exp %95 : vector<8x128xf32>
    %cst_39 = arith.constant 1.000000e+00 : f32
    %97 = vector.broadcast %cst_39 : f32 to vector<8x128xf32>
    %98 = arith.addf %97, %96 : vector<8x128xf32>
    %99 = arith.divf %97, %98 : vector<8x128xf32>
    %100 = vector.extract_strided_slice %87 {offsets = [0, 256], sizes = [8, 128], strides = [1, 1]} : vector<8x512xf32> to vector<8x128xf32>
    %101 = math.tanh %100 : vector<8x128xf32>
    %102 = vector.extract_strided_slice %87 {offsets = [0, 384], sizes = [8, 128], strides = [1, 1]} : vector<8x512xf32> to vector<8x128xf32>
    %103 = arith.negf %102 : vector<8x128xf32>
    %104 = math.exp %103 : vector<8x128xf32>
    %cst_40 = arith.constant 1.000000e+00 : f32
    %105 = vector.broadcast %cst_40 : f32 to vector<8x128xf32>
    %106 = arith.addf %105, %104 : vector<8x128xf32>
    %107 = arith.divf %105, %106 : vector<8x128xf32>
    %108 = arith.mulf %99, %78 : vector<8x128xf32>
    %109 = arith.mulf %93, %101 : vector<8x128xf32>
    %110 = arith.addf %108, %109 : vector<8x128xf32>
    %111 = math.tanh %110 : vector<8x128xf32>
    %112 = arith.mulf %107, %111 : vector<8x128xf32>
    %c3_i32 = arith.constant 3 : i32
    %113 = arith.index_cast %c3_i32 : i32 to index
    %c0_41 = arith.constant 0 : index
    %c0_42 = arith.constant 0 : index
    %114 = vector.load %arg13[%113, %c0_41, %c0_42] : memref<7x8x512xf32, #tpu.memory_space<vmem>>, vector<1x8x512xf32>
    %115 = vector.shape_cast %114 : vector<1x8x512xf32> to vector<8x512xf32>
    %116 = arith.truncf %112 : vector<8x128xf32> to vector<8x128xbf16>
    %c0_43 = arith.constant 0 : index
    %c0_44 = arith.constant 0 : index
    %117 = vector.load %arg3[%c0_43, %c0_44] : memref<128x512xbf16, #tpu.memory_space<vmem>>, vector<128x512xbf16>
    %cst_45 = arith.constant dense<0.000000e+00> : vector<8x512xf32>
    %118 = tpu.matmul %116, %117, %cst_45 {dimension_numbers = #tpu.dot_dimension_numbers<[1], [0], [0], [1], [0, 0, 1, 1], [], []>} : vector<8x128xbf16>, vector<128x512xbf16>, vector<8x512xf32> -> vector<8x512xf32>
    %119 = arith.addf %115, %118 : vector<8x512xf32>
    %120 = vector.extract_strided_slice %119 {offsets = [0, 0], sizes = [8, 128], strides = [1, 1]} : vector<8x512xf32> to vector<8x128xf32>
    %121 = arith.negf %120 : vector<8x128xf32>
    %122 = math.exp %121 : vector<8x128xf32>
    %cst_46 = arith.constant 1.000000e+00 : f32
    %123 = vector.broadcast %cst_46 : f32 to vector<8x128xf32>
    %124 = arith.addf %123, %122 : vector<8x128xf32>
    %125 = arith.divf %123, %124 : vector<8x128xf32>
    %126 = vector.extract_strided_slice %119 {offsets = [0, 128], sizes = [8, 128], strides = [1, 1]} : vector<8x512xf32> to vector<8x128xf32>
    %127 = arith.negf %126 : vector<8x128xf32>
    %128 = math.exp %127 : vector<8x128xf32>
    %cst_47 = arith.constant 1.000000e+00 : f32
    %129 = vector.broadcast %cst_47 : f32 to vector<8x128xf32>
    %130 = arith.addf %129, %128 : vector<8x128xf32>
    %131 = arith.divf %129, %130 : vector<8x128xf32>
    %132 = vector.extract_strided_slice %119 {offsets = [0, 256], sizes = [8, 128], strides = [1, 1]} : vector<8x512xf32> to vector<8x128xf32>
    %133 = math.tanh %132 : vector<8x128xf32>
    %134 = vector.extract_strided_slice %119 {offsets = [0, 384], sizes = [8, 128], strides = [1, 1]} : vector<8x512xf32> to vector<8x128xf32>
    %135 = arith.negf %134 : vector<8x128xf32>
    %136 = math.exp %135 : vector<8x128xf32>
    %cst_48 = arith.constant 1.000000e+00 : f32
    %137 = vector.broadcast %cst_48 : f32 to vector<8x128xf32>
    %138 = arith.addf %137, %136 : vector<8x128xf32>
    %139 = arith.divf %137, %138 : vector<8x128xf32>
    %140 = arith.mulf %131, %110 : vector<8x128xf32>
    %141 = arith.mulf %125, %133 : vector<8x128xf32>
    %142 = arith.addf %140, %141 : vector<8x128xf32>
    %143 = math.tanh %142 : vector<8x128xf32>
    %144 = arith.mulf %139, %143 : vector<8x128xf32>
    %c4_i32 = arith.constant 4 : i32
    %145 = arith.index_cast %c4_i32 : i32 to index
    %c0_49 = arith.constant 0 : index
    %c0_50 = arith.constant 0 : index
    %146 = vector.load %arg13[%145, %c0_49, %c0_50] : memref<7x8x512xf32, #tpu.memory_space<vmem>>, vector<1x8x512xf32>
    %147 = vector.shape_cast %146 : vector<1x8x512xf32> to vector<8x512xf32>
    %148 = arith.truncf %144 : vector<8x128xf32> to vector<8x128xbf16>
    %c0_51 = arith.constant 0 : index
    %c0_52 = arith.constant 0 : index
    %149 = vector.load %arg3[%c0_51, %c0_52] : memref<128x512xbf16, #tpu.memory_space<vmem>>, vector<128x512xbf16>
    %cst_53 = arith.constant dense<0.000000e+00> : vector<8x512xf32>
    %150 = tpu.matmul %148, %149, %cst_53 {dimension_numbers = #tpu.dot_dimension_numbers<[1], [0], [0], [1], [0, 0, 1, 1], [], []>} : vector<8x128xbf16>, vector<128x512xbf16>, vector<8x512xf32> -> vector<8x512xf32>
    %151 = arith.addf %147, %150 : vector<8x512xf32>
    %152 = vector.extract_strided_slice %151 {offsets = [0, 0], sizes = [8, 128], strides = [1, 1]} : vector<8x512xf32> to vector<8x128xf32>
    %153 = arith.negf %152 : vector<8x128xf32>
    %154 = math.exp %153 : vector<8x128xf32>
    %cst_54 = arith.constant 1.000000e+00 : f32
    %155 = vector.broadcast %cst_54 : f32 to vector<8x128xf32>
    %156 = arith.addf %155, %154 : vector<8x128xf32>
    %157 = arith.divf %155, %156 : vector<8x128xf32>
    %158 = vector.extract_strided_slice %151 {offsets = [0, 128], sizes = [8, 128], strides = [1, 1]} : vector<8x512xf32> to vector<8x128xf32>
    %159 = arith.negf %158 : vector<8x128xf32>
    %160 = math.exp %159 : vector<8x128xf32>
    %cst_55 = arith.constant 1.000000e+00 : f32
    %161 = vector.broadcast %cst_55 : f32 to vector<8x128xf32>
    %162 = arith.addf %161, %160 : vector<8x128xf32>
    %163 = arith.divf %161, %162 : vector<8x128xf32>
    %164 = vector.extract_strided_slice %151 {offsets = [0, 256], sizes = [8, 128], strides = [1, 1]} : vector<8x512xf32> to vector<8x128xf32>
    %165 = math.tanh %164 : vector<8x128xf32>
    %166 = vector.extract_strided_slice %151 {offsets = [0, 384], sizes = [8, 128], strides = [1, 1]} : vector<8x512xf32> to vector<8x128xf32>
    %167 = arith.negf %166 : vector<8x128xf32>
    %168 = math.exp %167 : vector<8x128xf32>
    %cst_56 = arith.constant 1.000000e+00 : f32
    %169 = vector.broadcast %cst_56 : f32 to vector<8x128xf32>
    %170 = arith.addf %169, %168 : vector<8x128xf32>
    %171 = arith.divf %169, %170 : vector<8x128xf32>
    %172 = arith.mulf %163, %142 : vector<8x128xf32>
    %173 = arith.mulf %157, %165 : vector<8x128xf32>
    %174 = arith.addf %172, %173 : vector<8x128xf32>
    %175 = math.tanh %174 : vector<8x128xf32>
    %176 = arith.mulf %171, %175 : vector<8x128xf32>
    %c5_i32 = arith.constant 5 : i32
    %177 = arith.index_cast %c5_i32 : i32 to index
    %c0_57 = arith.constant 0 : index
    %c0_58 = arith.constant 0 : index
    %178 = vector.load %arg13[%177, %c0_57, %c0_58] : memref<7x8x512xf32, #tpu.memory_space<vmem>>, vector<1x8x512xf32>
    %179 = vector.shape_cast %178 : vector<1x8x512xf32> to vector<8x512xf32>
    %180 = arith.truncf %176 : vector<8x128xf32> to vector<8x128xbf16>
    %c0_59 = arith.constant 0 : index
    %c0_60 = arith.constant 0 : index
    %181 = vector.load %arg3[%c0_59, %c0_60] : memref<128x512xbf16, #tpu.memory_space<vmem>>, vector<128x512xbf16>
    %cst_61 = arith.constant dense<0.000000e+00> : vector<8x512xf32>
    %182 = tpu.matmul %180, %181, %cst_61 {dimension_numbers = #tpu.dot_dimension_numbers<[1], [0], [0], [1], [0, 0, 1, 1], [], []>} : vector<8x128xbf16>, vector<128x512xbf16>, vector<8x512xf32> -> vector<8x512xf32>
    %183 = arith.addf %179, %182 : vector<8x512xf32>
    %184 = vector.extract_strided_slice %183 {offsets = [0, 0], sizes = [8, 128], strides = [1, 1]} : vector<8x512xf32> to vector<8x128xf32>
    %185 = arith.negf %184 : vector<8x128xf32>
    %186 = math.exp %185 : vector<8x128xf32>
    %cst_62 = arith.constant 1.000000e+00 : f32
    %187 = vector.broadcast %cst_62 : f32 to vector<8x128xf32>
    %188 = arith.addf %187, %186 : vector<8x128xf32>
    %189 = arith.divf %187, %188 : vector<8x128xf32>
    %190 = vector.extract_strided_slice %183 {offsets = [0, 128], sizes = [8, 128], strides = [1, 1]} : vector<8x512xf32> to vector<8x128xf32>
    %191 = arith.negf %190 : vector<8x128xf32>
    %192 = math.exp %191 : vector<8x128xf32>
    %cst_63 = arith.constant 1.000000e+00 : f32
    %193 = vector.broadcast %cst_63 : f32 to vector<8x128xf32>
    %194 = arith.addf %193, %192 : vector<8x128xf32>
    %195 = arith.divf %193, %194 : vector<8x128xf32>
    %196 = vector.extract_strided_slice %183 {offsets = [0, 256], sizes = [8, 128], strides = [1, 1]} : vector<8x512xf32> to vector<8x128xf32>
    %197 = math.tanh %196 : vector<8x128xf32>
    %198 = vector.extract_strided_slice %183 {offsets = [0, 384], sizes = [8, 128], strides = [1, 1]} : vector<8x512xf32> to vector<8x128xf32>
    %199 = arith.negf %198 : vector<8x128xf32>
    %200 = math.exp %199 : vector<8x128xf32>
    %cst_64 = arith.constant 1.000000e+00 : f32
    %201 = vector.broadcast %cst_64 : f32 to vector<8x128xf32>
    %202 = arith.addf %201, %200 : vector<8x128xf32>
    %203 = arith.divf %201, %202 : vector<8x128xf32>
    %204 = arith.mulf %195, %174 : vector<8x128xf32>
    %205 = arith.mulf %189, %197 : vector<8x128xf32>
    %206 = arith.addf %204, %205 : vector<8x128xf32>
    %207 = math.tanh %206 : vector<8x128xf32>
    %208 = arith.mulf %203, %207 : vector<8x128xf32>
    %c5_i32_65 = arith.constant 5 : i32
    %c6_66 = arith.constant 6 : index
    %c0_67 = arith.constant 0 : index
    %c0_68 = arith.constant 0 : index
    %209 = vector.load %arg13[%c6_66, %c0_67, %c0_68] : memref<7x8x512xf32, #tpu.memory_space<vmem>>, vector<1x8x512xf32>
    %210 = vector.shape_cast %209 : vector<1x8x512xf32> to vector<8x512xf32>
    %211 = arith.truncf %208 : vector<8x128xf32> to vector<8x128xbf16>
    %c0_69 = arith.constant 0 : index
    %c0_70 = arith.constant 0 : index
    %212 = vector.load %arg6[%c0_69, %c0_70] : memref<128x512xbf16, #tpu.memory_space<vmem>>, vector<128x512xbf16>
    %cst_71 = arith.constant dense<0.000000e+00> : vector<8x512xf32>
    %213 = tpu.matmul %211, %212, %cst_71 {dimension_numbers = #tpu.dot_dimension_numbers<[1], [0], [0], [1], [0, 0, 1, 1], [], []>} : vector<8x128xbf16>, vector<128x512xbf16>, vector<8x512xf32> -> vector<8x512xf32>
    %214 = arith.addf %210, %213 : vector<8x512xf32>
    %215 = vector.extract_strided_slice %214 {offsets = [0, 0], sizes = [8, 128], strides = [1, 1]} : vector<8x512xf32> to vector<8x128xf32>
    %216 = arith.negf %215 : vector<8x128xf32>
    %217 = math.exp %216 : vector<8x128xf32>
    %cst_72 = arith.constant 1.000000e+00 : f32
    %218 = vector.broadcast %cst_72 : f32 to vector<8x128xf32>
    %219 = arith.addf %218, %217 : vector<8x128xf32>
    %220 = arith.divf %218, %219 : vector<8x128xf32>
    %221 = vector.extract_strided_slice %214 {offsets = [0, 128], sizes = [8, 128], strides = [1, 1]} : vector<8x512xf32> to vector<8x128xf32>
    %222 = arith.negf %221 : vector<8x128xf32>
    %223 = math.exp %222 : vector<8x128xf32>
    %cst_73 = arith.constant 1.000000e+00 : f32
    %224 = vector.broadcast %cst_73 : f32 to vector<8x128xf32>
    %225 = arith.addf %224, %223 : vector<8x128xf32>
    %226 = arith.divf %224, %225 : vector<8x128xf32>
    %227 = vector.extract_strided_slice %214 {offsets = [0, 256], sizes = [8, 128], strides = [1, 1]} : vector<8x512xf32> to vector<8x128xf32>
    %228 = math.tanh %227 : vector<8x128xf32>
    %229 = vector.extract_strided_slice %214 {offsets = [0, 384], sizes = [8, 128], strides = [1, 1]} : vector<8x512xf32> to vector<8x128xf32>
    %230 = arith.negf %229 : vector<8x128xf32>
    %231 = math.exp %230 : vector<8x128xf32>
    %cst_74 = arith.constant 1.000000e+00 : f32
    %232 = vector.broadcast %cst_74 : f32 to vector<8x128xf32>
    %233 = arith.addf %232, %231 : vector<8x128xf32>
    %234 = arith.divf %232, %233 : vector<8x128xf32>
    %235 = arith.mulf %226, %206 : vector<8x128xf32>
    %236 = arith.mulf %220, %228 : vector<8x128xf32>
    %237 = arith.addf %235, %236 : vector<8x128xf32>
    %238 = math.tanh %237 : vector<8x128xf32>
    %239 = arith.mulf %234, %238 : vector<8x128xf32>
    %240 = arith.truncf %239 : vector<8x128xf32> to vector<8x128xbf16>
    %c0_75 = arith.constant 0 : index
    %c0_76 = arith.constant 0 : index
    %c0_77 = arith.constant 0 : index
    %241 = vector.load %arg14[%c0_75, %c0_76, %c0_77] : memref<5x8x128xbf16, #tpu.memory_space<vmem>>, vector<1x8x128xbf16>
    %242 = vector.shape_cast %241 : vector<1x8x128xbf16> to vector<8x128xbf16>
    %243 = vector.shape_cast %240 : vector<8x128xbf16> to vector<1x8x128xbf16>
    tpu.vector_store %arg14[%c0_75, %c0_76, %c0_77], %243 {strides = array<i32>} : memref<5x8x128xbf16, #tpu.memory_space<vmem>>, vector<1x8x128xbf16>,
    %c1_i32_78 = arith.constant 1 : i32
    %244 = arith.truncf %239 : vector<8x128xf32> to vector<8x128xbf16>
    %c0_79 = arith.constant 0 : index
    %c0_80 = arith.constant 0 : index
    %245 = vector.load %arg8[%c0_79, %c0_80] : memref<128x512xbf16, #tpu.memory_space<vmem>>, vector<128x512xbf16>
    %cst_81 = arith.constant dense<0.000000e+00> : vector<8x512xf32>
    %246 = tpu.matmul %244, %245, %cst_81 {dimension_numbers = #tpu.dot_dimension_numbers<[1], [0], [0], [1], [0, 0, 1, 1], [], []>} : vector<8x128xbf16>, vector<128x512xbf16>, vector<8x512xf32> -> vector<8x512xf32>
    %c0_82 = arith.constant 0 : index
    %c0_83 = arith.constant 0 : index
    %247 = vector.load %arg9[%c0_82, %c0_83] : memref<1x512xf32, #tpu.memory_space<vmem>>, vector<1x512xf32>
    %248 = vector.broadcast %247 : vector<1x512xf32> to vector<8x512xf32>
    %249 = arith.addf %246, %248 : vector<8x512xf32>
    %250 = vector.extract_strided_slice %249 {offsets = [0, 0], sizes = [8, 128], strides = [1, 1]} : vector<8x512xf32> to vector<8x128xf32>
    %251 = arith.negf %250 : vector<8x128xf32>
    %252 = math.exp %251 : vector<8x128xf32>
    %cst_84 = arith.constant 1.000000e+00 : f32
    %253 = vector.broadcast %cst_84 : f32 to vector<8x128xf32>
    %254 = arith.addf %253, %252 : vector<8x128xf32>
    %255 = arith.divf %253, %254 : vector<8x128xf32>
    %256 = vector.extract_strided_slice %249 {offsets = [0, 128], sizes = [8, 128], strides = [1, 1]} : vector<8x512xf32> to vector<8x128xf32>
    %257 = arith.negf %256 : vector<8x128xf32>
    %258 = math.exp %257 : vector<8x128xf32>
    %cst_85 = arith.constant 1.000000e+00 : f32
    %259 = vector.broadcast %cst_85 : f32 to vector<8x128xf32>
    %260 = arith.addf %259, %258 : vector<8x128xf32>
    %261 = arith.divf %259, %260 : vector<8x128xf32>
    %262 = vector.extract_strided_slice %249 {offsets = [0, 256], sizes = [8, 128], strides = [1, 1]} : vector<8x512xf32> to vector<8x128xf32>
    %263 = math.tanh %262 : vector<8x128xf32>
    %264 = vector.extract_strided_slice %249 {offsets = [0, 384], sizes = [8, 128], strides = [1, 1]} : vector<8x512xf32> to vector<8x128xf32>
    %265 = arith.negf %264 : vector<8x128xf32>
    %266 = math.exp %265 : vector<8x128xf32>
    %cst_86 = arith.constant 1.000000e+00 : f32
    %267 = vector.broadcast %cst_86 : f32 to vector<8x128xf32>
    %268 = arith.addf %267, %266 : vector<8x128xf32>
    %269 = arith.divf %267, %268 : vector<8x128xf32>
    %270 = arith.mulf %261, %237 : vector<8x128xf32>
    %271 = arith.mulf %255, %263 : vector<8x128xf32>
    %272 = arith.addf %270, %271 : vector<8x128xf32>
    %273 = math.tanh %272 : vector<8x128xf32>
    %274 = arith.mulf %269, %273 : vector<8x128xf32>
    %275 = arith.truncf %274 : vector<8x128xf32> to vector<8x128xbf16>
    %276 = arith.index_cast %c1_i32_78 : i32 to index
    %c0_87 = arith.constant 0 : index
    %c0_88 = arith.constant 0 : index
    %277 = vector.load %arg14[%276, %c0_87, %c0_88] : memref<5x8x128xbf16, #tpu.memory_space<vmem>>, vector<1x8x128xbf16>
    %278 = vector.shape_cast %277 : vector<1x8x128xbf16> to vector<8x128xbf16>
    %279 = vector.shape_cast %275 : vector<8x128xbf16> to vector<1x8x128xbf16>
    tpu.vector_store %arg14[%276, %c0_87, %c0_88], %279 {strides = array<i32>} : memref<5x8x128xbf16, #tpu.memory_space<vmem>>, vector<1x8x128xbf16>,
    %c2_i32_89 = arith.constant 2 : i32
    %280 = arith.truncf %274 : vector<8x128xf32> to vector<8x128xbf16>
    %c0_90 = arith.constant 0 : index
    %c0_91 = arith.constant 0 : index
    %281 = vector.load %arg8[%c0_90, %c0_91] : memref<128x512xbf16, #tpu.memory_space<vmem>>, vector<128x512xbf16>
    %cst_92 = arith.constant dense<0.000000e+00> : vector<8x512xf32>
    %282 = tpu.matmul %280, %281, %cst_92 {dimension_numbers = #tpu.dot_dimension_numbers<[1], [0], [0], [1], [0, 0, 1, 1], [], []>} : vector<8x128xbf16>, vector<128x512xbf16>, vector<8x512xf32> -> vector<8x512xf32>
    %c0_93 = arith.constant 0 : index
    %c0_94 = arith.constant 0 : index
    %283 = vector.load %arg9[%c0_93, %c0_94] : memref<1x512xf32, #tpu.memory_space<vmem>>, vector<1x512xf32>
    %284 = vector.broadcast %283 : vector<1x512xf32> to vector<8x512xf32>
    %285 = arith.addf %282, %284 : vector<8x512xf32>
    %286 = vector.extract_strided_slice %285 {offsets = [0, 0], sizes = [8, 128], strides = [1, 1]} : vector<8x512xf32> to vector<8x128xf32>
    %287 = arith.negf %286 : vector<8x128xf32>
    %288 = math.exp %287 : vector<8x128xf32>
    %cst_95 = arith.constant 1.000000e+00 : f32
    %289 = vector.broadcast %cst_95 : f32 to vector<8x128xf32>
    %290 = arith.addf %289, %288 : vector<8x128xf32>
    %291 = arith.divf %289, %290 : vector<8x128xf32>
    %292 = vector.extract_strided_slice %285 {offsets = [0, 128], sizes = [8, 128], strides = [1, 1]} : vector<8x512xf32> to vector<8x128xf32>
    %293 = arith.negf %292 : vector<8x128xf32>
    %294 = math.exp %293 : vector<8x128xf32>
    %cst_96 = arith.constant 1.000000e+00 : f32
    %295 = vector.broadcast %cst_96 : f32 to vector<8x128xf32>
    %296 = arith.addf %295, %294 : vector<8x128xf32>
    %297 = arith.divf %295, %296 : vector<8x128xf32>
    %298 = vector.extract_strided_slice %285 {offsets = [0, 256], sizes = [8, 128], strides = [1, 1]} : vector<8x512xf32> to vector<8x128xf32>
    %299 = math.tanh %298 : vector<8x128xf32>
    %300 = vector.extract_strided_slice %285 {offsets = [0, 384], sizes = [8, 128], strides = [1, 1]} : vector<8x512xf32> to vector<8x128xf32>
    %301 = arith.negf %300 : vector<8x128xf32>
    %302 = math.exp %301 : vector<8x128xf32>
    %cst_97 = arith.constant 1.000000e+00 : f32
    %303 = vector.broadcast %cst_97 : f32 to vector<8x128xf32>
    %304 = arith.addf %303, %302 : vector<8x128xf32>
    %305 = arith.divf %303, %304 : vector<8x128xf32>
    %306 = arith.mulf %297, %272 : vector<8x128xf32>
    %307 = arith.mulf %291, %299 : vector<8x128xf32>
    %308 = arith.addf %306, %307 : vector<8x128xf32>
    %309 = math.tanh %308 : vector<8x128xf32>
    %310 = arith.mulf %305, %309 : vector<8x128xf32>
    %311 = arith.truncf %310 : vector<8x128xf32> to vector<8x128xbf16>
    %312 = arith.index_cast %c2_i32_89 : i32 to index
    %c0_98 = arith.constant 0 : index
    %c0_99 = arith.constant 0 : index
    %313 = vector.load %arg14[%312, %c0_98, %c0_99] : memref<5x8x128xbf16, #tpu.memory_space<vmem>>, vector<1x8x128xbf16>
    %314 = vector.shape_cast %313 : vector<1x8x128xbf16> to vector<8x128xbf16>
    %315 = vector.shape_cast %311 : vector<8x128xbf16> to vector<1x8x128xbf16>
    tpu.vector_store %arg14[%312, %c0_98, %c0_99], %315 {strides = array<i32>} : memref<5x8x128xbf16, #tpu.memory_space<vmem>>, vector<1x8x128xbf16>,
    %c3_i32_100 = arith.constant 3 : i32
    %316 = arith.truncf %310 : vector<8x128xf32> to vector<8x128xbf16>
    %c0_101 = arith.constant 0 : index
    %c0_102 = arith.constant 0 : index
    %317 = vector.load %arg8[%c0_101, %c0_102] : memref<128x512xbf16, #tpu.memory_space<vmem>>, vector<128x512xbf16>
    %cst_103 = arith.constant dense<0.000000e+00> : vector<8x512xf32>
    %318 = tpu.matmul %316, %317, %cst_103 {dimension_numbers = #tpu.dot_dimension_numbers<[1], [0], [0], [1], [0, 0, 1, 1], [], []>} : vector<8x128xbf16>, vector<128x512xbf16>, vector<8x512xf32> -> vector<8x512xf32>
    %c0_104 = arith.constant 0 : index
    %c0_105 = arith.constant 0 : index
    %319 = vector.load %arg9[%c0_104, %c0_105] : memref<1x512xf32, #tpu.memory_space<vmem>>, vector<1x512xf32>
    %320 = vector.broadcast %319 : vector<1x512xf32> to vector<8x512xf32>
    %321 = arith.addf %318, %320 : vector<8x512xf32>
    %322 = vector.extract_strided_slice %321 {offsets = [0, 0], sizes = [8, 128], strides = [1, 1]} : vector<8x512xf32> to vector<8x128xf32>
    %323 = arith.negf %322 : vector<8x128xf32>
    %324 = math.exp %323 : vector<8x128xf32>
    %cst_106 = arith.constant 1.000000e+00 : f32
    %325 = vector.broadcast %cst_106 : f32 to vector<8x128xf32>
    %326 = arith.addf %325, %324 : vector<8x128xf32>
    %327 = arith.divf %325, %326 : vector<8x128xf32>
    %328 = vector.extract_strided_slice %321 {offsets = [0, 128], sizes = [8, 128], strides = [1, 1]} : vector<8x512xf32> to vector<8x128xf32>
    %329 = arith.negf %328 : vector<8x128xf32>
    %330 = math.exp %329 : vector<8x128xf32>
    %cst_107 = arith.constant 1.000000e+00 : f32
    %331 = vector.broadcast %cst_107 : f32 to vector<8x128xf32>
    %332 = arith.addf %331, %330 : vector<8x128xf32>
    %333 = arith.divf %331, %332 : vector<8x128xf32>
    %334 = vector.extract_strided_slice %321 {offsets = [0, 256], sizes = [8, 128], strides = [1, 1]} : vector<8x512xf32> to vector<8x128xf32>
    %335 = math.tanh %334 : vector<8x128xf32>
    %336 = vector.extract_strided_slice %321 {offsets = [0, 384], sizes = [8, 128], strides = [1, 1]} : vector<8x512xf32> to vector<8x128xf32>
    %337 = arith.negf %336 : vector<8x128xf32>
    %338 = math.exp %337 : vector<8x128xf32>
    %cst_108 = arith.constant 1.000000e+00 : f32
    %339 = vector.broadcast %cst_108 : f32 to vector<8x128xf32>
    %340 = arith.addf %339, %338 : vector<8x128xf32>
    %341 = arith.divf %339, %340 : vector<8x128xf32>
    %342 = arith.mulf %333, %308 : vector<8x128xf32>
    %343 = arith.mulf %327, %335 : vector<8x128xf32>
    %344 = arith.addf %342, %343 : vector<8x128xf32>
    %345 = math.tanh %344 : vector<8x128xf32>
    %346 = arith.mulf %341, %345 : vector<8x128xf32>
    %347 = arith.truncf %346 : vector<8x128xf32> to vector<8x128xbf16>
    %348 = arith.index_cast %c3_i32_100 : i32 to index
    %c0_109 = arith.constant 0 : index
    %c0_110 = arith.constant 0 : index
    %349 = vector.load %arg14[%348, %c0_109, %c0_110] : memref<5x8x128xbf16, #tpu.memory_space<vmem>>, vector<1x8x128xbf16>
    %350 = vector.shape_cast %349 : vector<1x8x128xbf16> to vector<8x128xbf16>
    %351 = vector.shape_cast %347 : vector<8x128xbf16> to vector<1x8x128xbf16>
    tpu.vector_store %arg14[%348, %c0_109, %c0_110], %351 {strides = array<i32>} : memref<5x8x128xbf16, #tpu.memory_space<vmem>>, vector<1x8x128xbf16>,
    %c4_i32_111 = arith.constant 4 : i32
    %352 = arith.truncf %346 : vector<8x128xf32> to vector<8x128xbf16>
    %c0_112 = arith.constant 0 : index
    %c0_113 = arith.constant 0 : index
    %353 = vector.load %arg8[%c0_112, %c0_113] : memref<128x512xbf16, #tpu.memory_space<vmem>>, vector<128x512xbf16>
    %cst_114 = arith.constant dense<0.000000e+00> : vector<8x512xf32>
    %354 = tpu.matmul %352, %353, %cst_114 {dimension_numbers = #tpu.dot_dimension_numbers<[1], [0], [0], [1], [0, 0, 1, 1], [], []>} : vector<8x128xbf16>, vector<128x512xbf16>, vector<8x512xf32> -> vector<8x512xf32>
    %c0_115 = arith.constant 0 : index
    %c0_116 = arith.constant 0 : index
    %355 = vector.load %arg9[%c0_115, %c0_116] : memref<1x512xf32, #tpu.memory_space<vmem>>, vector<1x512xf32>
    %356 = vector.broadcast %355 : vector<1x512xf32> to vector<8x512xf32>
    %357 = arith.addf %354, %356 : vector<8x512xf32>
    %358 = vector.extract_strided_slice %357 {offsets = [0, 0], sizes = [8, 128], strides = [1, 1]} : vector<8x512xf32> to vector<8x128xf32>
    %359 = arith.negf %358 : vector<8x128xf32>
    %360 = math.exp %359 : vector<8x128xf32>
    %cst_117 = arith.constant 1.000000e+00 : f32
    %361 = vector.broadcast %cst_117 : f32 to vector<8x128xf32>
    %362 = arith.addf %361, %360 : vector<8x128xf32>
    %363 = arith.divf %361, %362 : vector<8x128xf32>
    %364 = vector.extract_strided_slice %357 {offsets = [0, 128], sizes = [8, 128], strides = [1, 1]} : vector<8x512xf32> to vector<8x128xf32>
    %365 = arith.negf %364 : vector<8x128xf32>
    %366 = math.exp %365 : vector<8x128xf32>
    %cst_118 = arith.constant 1.000000e+00 : f32
    %367 = vector.broadcast %cst_118 : f32 to vector<8x128xf32>
    %368 = arith.addf %367, %366 : vector<8x128xf32>
    %369 = arith.divf %367, %368 : vector<8x128xf32>
    %370 = vector.extract_strided_slice %357 {offsets = [0, 256], sizes = [8, 128], strides = [1, 1]} : vector<8x512xf32> to vector<8x128xf32>
    %371 = math.tanh %370 : vector<8x128xf32>
    %372 = vector.extract_strided_slice %357 {offsets = [0, 384], sizes = [8, 128], strides = [1, 1]} : vector<8x512xf32> to vector<8x128xf32>
    %373 = arith.negf %372 : vector<8x128xf32>
    %374 = math.exp %373 : vector<8x128xf32>
    %cst_119 = arith.constant 1.000000e+00 : f32
    %375 = vector.broadcast %cst_119 : f32 to vector<8x128xf32>
    %376 = arith.addf %375, %374 : vector<8x128xf32>
    %377 = arith.divf %375, %376 : vector<8x128xf32>
    %378 = arith.mulf %369, %344 : vector<8x128xf32>
    %379 = arith.mulf %363, %371 : vector<8x128xf32>
    %380 = arith.addf %378, %379 : vector<8x128xf32>
    %381 = math.tanh %380 : vector<8x128xf32>
    %382 = arith.mulf %377, %381 : vector<8x128xf32>
    %383 = arith.truncf %382 : vector<8x128xf32> to vector<8x128xbf16>
    %384 = arith.index_cast %c4_i32_111 : i32 to index
    %c0_120 = arith.constant 0 : index
    %c0_121 = arith.constant 0 : index
    %385 = vector.load %arg14[%384, %c0_120, %c0_121] : memref<5x8x128xbf16, #tpu.memory_space<vmem>>, vector<1x8x128xbf16>
    %386 = vector.shape_cast %385 : vector<1x8x128xbf16> to vector<8x128xbf16>
    %387 = vector.shape_cast %383 : vector<8x128xbf16> to vector<1x8x128xbf16>
    tpu.vector_store %arg14[%384, %c0_120, %c0_121], %387 {strides = array<i32>} : memref<5x8x128xbf16, #tpu.memory_space<vmem>>, vector<1x8x128xbf16>,
    %c4_i32_122 = arith.constant 4 : i32
    %c0_123 = arith.constant 0 : index
    %c0_124 = arith.constant 0 : index
    %c0_125 = arith.constant 0 : index
    %388 = vector.load %arg14[%c0_123, %c0_124, %c0_125] : memref<5x8x128xbf16, #tpu.memory_space<vmem>>, vector<5x8x128xbf16>
    %389 = vector.shape_cast %388 : vector<5x8x128xbf16> to vector<40x128xbf16>
    %c0_126 = arith.constant 0 : index
    %c0_127 = arith.constant 0 : index
    %390 = vector.load %arg10[%c0_126, %c0_127] : memref<128x8xbf16, #tpu.memory_space<vmem>>, vector<128x8xbf16>
    %cst_128 = arith.constant dense<0.000000e+00> : vector<40x8xf32>
    %391 = tpu.matmul %389, %390, %cst_128 {dimension_numbers = #tpu.dot_dimension_numbers<[1], [0], [0], [1], [0, 0, 1, 1], [], []>} : vector<40x128xbf16>, vector<128x8xbf16>, vector<40x8xf32> -> vector<40x8xf32>
    %c0_129 = arith.constant 0 : index
    %c0_130 = arith.constant 0 : index
    %392 = vector.load %arg11[%c0_129, %c0_130] : memref<1x8xf32, #tpu.memory_space<vmem>>, vector<1x8xf32>
    %393 = vector.broadcast %392 : vector<1x8xf32> to vector<40x8xf32>
    %394 = arith.addf %391, %393 : vector<40x8xf32>
    %395 = vector.shape_cast %394 : vector<40x8xf32> to vector<5x8x8xf32>
    %c0_131 = arith.constant 0 : index
    %c0_132 = arith.constant 0 : index
    %c0_133 = arith.constant 0 : index
    %396 = vector.load %arg12[%c0_131, %c0_132, %c0_133] : memref<5x8x8xf32, #tpu.memory_space<vmem>>, vector<5x8x8xf32>
    tpu.vector_store %arg12[%c0_131, %c0_132, %c0_133], %395 {strides = array<i32>} : memref<5x8x8xf32, #tpu.memory_space<vmem>>, vector<5x8x8xf32>,
    return
  }
  func.func @transform_0(%arg0: i32) -> (i32, i32, i32) {
    %c0_i32 = arith.constant 0 : i32
    %c0_i32_0 = arith.constant 0 : i32
    %c0_i32_1 = arith.constant 0 : i32
    return %c0_i32, %arg0, %c0_i32_0 : i32, i32, i32
  }
  func.func @transform_1(%arg0: i32) -> (i32, i32) {
    %c0_i32 = arith.constant 0 : i32
    %c0_i32_0 = arith.constant 0 : i32
    %c0_i32_1 = arith.constant 0 : i32
    return %c0_i32, %c0_i32_0 : i32, i32
  }
  func.func @transform_2(%arg0: i32) -> (i32, i32) {
    %c0_i32 = arith.constant 0 : i32
    %c0_i32_0 = arith.constant 0 : i32
    %c0_i32_1 = arith.constant 0 : i32
    return %c0_i32, %c0_i32_0 : i32, i32
  }
  func.func @transform_3(%arg0: i32) -> (i32, i32) {
    %c0_i32 = arith.constant 0 : i32
    %c0_i32_0 = arith.constant 0 : i32
    %c0_i32_1 = arith.constant 0 : i32
    return %c0_i32, %c0_i32_0 : i32, i32
  }
  func.func @transform_4(%arg0: i32) -> (i32, i32) {
    %c0_i32 = arith.constant 0 : i32
    %c0_i32_0 = arith.constant 0 : i32
    %c0_i32_1 = arith.constant 0 : i32
    return %c0_i32, %c0_i32_0 : i32, i32
  }
  func.func @transform_5(%arg0: i32) -> (i32, i32) {
    %c0_i32 = arith.constant 0 : i32
    %c0_i32_0 = arith.constant 0 : i32
    %c0_i32_1 = arith.constant 0 : i32
    return %c0_i32, %c0_i32_0 : i32, i32
  }
  func.func @transform_6(%arg0: i32) -> (i32, i32) {
    %c0_i32 = arith.constant 0 : i32
    %c0_i32_0 = arith.constant 0 : i32
    %c0_i32_1 = arith.constant 0 : i32
    return %c0_i32, %c0_i32_0 : i32, i32
  }
  func.func @transform_7(%arg0: i32) -> (i32, i32) {
    %c0_i32 = arith.constant 0 : i32
    %c0_i32_0 = arith.constant 0 : i32
    %c0_i32_1 = arith.constant 0 : i32
    return %c0_i32, %c0_i32_0 : i32, i32
  }
  func.func @transform_8(%arg0: i32) -> (i32, i32) {
    %c0_i32 = arith.constant 0 : i32
    %c0_i32_0 = arith.constant 0 : i32
    %c0_i32_1 = arith.constant 0 : i32
    return %c0_i32, %c0_i32_0 : i32, i32
  }
  func.func @transform_9(%arg0: i32) -> (i32, i32) {
    %c0_i32 = arith.constant 0 : i32
    %c0_i32_0 = arith.constant 0 : i32
    %c0_i32_1 = arith.constant 0 : i32
    return %c0_i32, %c0_i32_0 : i32, i32
  }
  func.func @transform_10(%arg0: i32) -> (i32, i32) {
    %c0_i32 = arith.constant 0 : i32
    %c0_i32_0 = arith.constant 0 : i32
    %c0_i32_1 = arith.constant 0 : i32
    return %c0_i32, %c0_i32_0 : i32, i32
  }
  func.func @transform_11(%arg0: i32) -> (i32, i32, i32) {
    %c0_i32 = arith.constant 0 : i32
    %c0_i32_0 = arith.constant 0 : i32
    %c0_i32_1 = arith.constant 0 : i32
    return %c0_i32, %arg0, %c0_i32_0 : i32, i32, i32
  }
}

</mosaic_0001>

<bundles_post_ra>
// kernel: tpu_custom_call.1
= control target key start
LH: loop header
LB: loop body
LE: loop exit
PB: predicated region body
PF: predicated region fallthrough
CT: control target
= control target key end

     0   :  { %16 = vsyncpa [#allocation5], 0  ;;  %s4637_s0 = inlined_call_operand.vmem [shape: f32[6,8,8], index: 0, kind: input, shape index: {}]   ;;  %s4638_s1 = inlined_call_operand.vmem [shape: bf16[8,512], index: 1, kind: input, shape index: {}]   ;;  %s4639_s2 = inlined_call_operand.hbm [shape: bf16[128,512], index: 2, kind: input, shape index: {}]   ;;  %s4640_s3 = inlined_call_operand.hbm [shape: f32[1,512], index: 3, kind: input, shape index: {}]   ;;  %s4641_s4 = inlined_call_operand.vmem [shape: bf16[8,512], index: 4, kind: input, shape index: {}]   ;;  %s4642_s5 = inlined_call_operand.hbm [shape: bf16[128,512], index: 5, kind: input, shape index: {}]   ;;  %s4643_s6 = inlined_call_operand.vmem [shape: f32[1,512], index: 6, kind: input, shape index: {}]   ;;  %s4644_s7 = inlined_call_operand.hbm [shape: bf16[128,512], index: 7, kind: input, shape index: {}]   ;;  %s4645_s8 = inlined_call_operand.vmem [shape: f32[1,512], index: 8, kind: input, shape index: {}]   ;;  %s4646_s9 = inlined_call_operand.vmem [shape: bf16[128,8], index: 9, kind: input, shape index: {}]   ;;  %s4647_s10 = inlined_call_operand.vmem [shape: f32[1,8], index: 10, kind: input, shape index: {}]   ;;  %s4648_s11 = inlined_call_operand.hbm [shape: f32[5,8,8], index: 11, kind: output, shape index: {}]  }
   0x1   :  { %17 = vsyncpa [#allocation8], 0 }
   0x2   :  { %18 = vsyncpa [#allocation11], 0 }
   0x3   :  { %19 = vsyncpa [#allocation6], 0  ;;  %s3799_s17 = smov [#allocation7]   ;;  %s3800_s19 = smov [#allocation4]  }
   0x4   :  { %s42_s18 = sshll.u32 %s3799_s17, 4  ;;  %s29_s20 = sshll.u32 %s3800_s19, 4  ;;  %s43_s18 = int_to_ptr.vmem [resolvable:$true] %s42_s18  ;;  %s3871_s20 = int_to_ptr.vmem [resolvable:$true] %s29_s20 }
   0x5   :  { %s3681_s23 = scalar_lea.hbm %s4640_s3, 64 }
   0x6   :  { %p3682_p0 = scmp.ne.s32.totalorder %s4640_s3, %s3681_s23  ;;  %p3685_p1 = scmp.lt.u32.totalorder %s3681_s23, %s4640_s3 }
   0x8   :  { %p3687_p2 = pnand %p3685_p1, %p3682_p0 }
   0xa   :  { %3690 = shalt.err (!%p3687_p2)
}
   0xb   :  { %s3691_s28 = scalar_lea.vmem %s43_s18, 64  ;;  %p3696_p4 = scmp.lt.s32.totalorder %s43_s18, %s43_s18 }
   0xc   :  { %p3692_p3 = scmp.ne.s32.totalorder %s43_s18, %s3691_s28  ;;  %p3697_p5 = scmp.lt.s32.totalorder %s3691_s28, %s3691_s28 }
   0xe   :  { %p3698_p6 = por %p3697_p5, %p3696_p4 }
  0x10   :  { %p3699_p7 = pnand %p3698_p6, %p3692_p3 }
  0x12   :  { %3702 = shalt.err (!%p3699_p7)
}
  0x13   :  { %45 = dma.hbm_to_vmem [thread:$0]  %s4640_s3, 64, %s43_s18, [#allocation8]  }
  0x14   :  { %s3703_s14 = scalar_lea.hbm %s4639_s2, 4096 }
  0x15   :  { %p3704_p8 = scmp.ne.s32.totalorder %s4639_s2, %s3703_s14  ;;  %p3707_p9 = scmp.lt.u32.totalorder %s3703_s14, %s4639_s2 }
  0x17   :  { %p3709_p10 = pnand %p3707_p9, %p3704_p8 }
  0x19   :  { %3712 = shalt.err (!%p3709_p10)
}
  0x1a   :  { %s3713_s21 = scalar_lea.vmem %s3871_s20, 4096  ;;  %p3718_p12 = scmp.lt.s32.totalorder %s3871_s20, %s3871_s20 }
  0x1b   :  { %p3714_p11 = scmp.ne.s32.totalorder %s3871_s20, %s3713_s21  ;;  %p3719_p13 = scmp.lt.s32.totalorder %s3713_s21, %s3713_s21 }
  0x1d   :  { %p3720_p0 = por %p3719_p13, %p3718_p12 }
  0x1f   :  { %p3721_p1 = pnand %p3720_p0, %p3714_p11 }
  0x21   :  { %3724 = shalt.err (!%p3721_p1)
}
  0x22   :  { %s3801_s3 = smov 256   ;;  %s3802_s18 = smov 16  }
  0x23   :  { %35 = dma.hbm_to_vmem [thread:$0]  %s4639_s2, 4096, %s3871_s20, [#allocation5], %s3801_s3, %s3801_s3, %s3802_s18  }
  0x24   :  { %s3803_s24 = smov [#allocation9]   ;;  %s3804_s26 = smov [#allocation10]  }
  0x25   :  { %s53_s25 = sshll.u32 %s3803_s24, 4  ;;  %s67_s27 = sshll.u32 %s3804_s26, 4  ;;  %s54_s25 = int_to_ptr.vmem [resolvable:$true] %s53_s25  ;;  %s3905_s27 = int_to_ptr.vmem [resolvable:$true] %s67_s27 }
  0x26   :  { %s3725_s30 = scalar_lea.hbm %s4642_s5, 4096 }
  0x27   :  { %p3726_p2 = scmp.ne.s32.totalorder %s4642_s5, %s3725_s30  ;;  %p3729_p3 = scmp.lt.u32.totalorder %s3725_s30, %s4642_s5 }
  0x29   :  { %p3731_p4 = pnand %p3729_p3, %p3726_p2 }
  0x2b   :  { %3734 = shalt.err (!%p3731_p4)
}
  0x2c   :  { %s3735_s2 = scalar_lea.vmem %s54_s25, 4096  ;;  %p3740_p6 = scmp.lt.s32.totalorder %s54_s25, %s54_s25 }
  0x2d   :  { %p3736_p5 = scmp.ne.s32.totalorder %s54_s25, %s3735_s2  ;;  %p3741_p7 = scmp.lt.s32.totalorder %s3735_s2, %s3735_s2 }
  0x2f   :  { %p3742_p8 = por %p3741_p7, %p3740_p6 }
  0x31   :  { %p3743_p9 = pnand %p3742_p8, %p3736_p5 }
  0x33   :  { %3746 = shalt.err (!%p3743_p9)
}
  0x34   :  { %59 = dma.hbm_to_vmem [thread:$0]  %s4642_s5, 4096, %s54_s25, [#allocation8], %s3801_s3, %s3801_s3, %s3802_s18  }
  0x35   :  { %s3747_s21 = scalar_lea.hbm %s4644_s7, 4096 }
  0x36   :  { %p3748_p10 = scmp.ne.s32.totalorder %s4644_s7, %s3747_s21  ;;  %p3751_p11 = scmp.lt.u32.totalorder %s3747_s21, %s4644_s7 }
  0x38   :  { %p3753_p12 = pnand %p3751_p11, %p3748_p10 }
  0x3a   :  { %3756 = shalt.err (!%p3753_p12)
}
  0x3b   :  { %s3757_s28 = scalar_lea.vmem %s3905_s27, 4096  ;;  %p3762_p0 = scmp.lt.s32.totalorder %s3905_s27, %s3905_s27 }
  0x3c   :  { %p3758_p13 = scmp.ne.s32.totalorder %s3905_s27, %s3757_s28  ;;  %p3763_p1 = scmp.lt.s32.totalorder %s3757_s28, %s3757_s28 }
  0x3e   :  { %p3764_p2 = por %p3763_p1, %p3762_p0 }
  0x40   :  { %p3765_p3 = pnand %p3764_p2, %p3758_p13 }
  0x42   :  { %3768 = shalt.err (!%p3765_p3)
}
  0x43   :  { %73 = dma.hbm_to_vmem [thread:$0]  %s4644_s7, 4096, %s3905_s27, [#allocation11], %s3801_s3, %s3801_s3, %s3802_s18  }
  0x44   :  { %3791 = dma.done.wait [#allocation5], 4096  }
  0x45   :  { %3792 = vsyncadd [#allocation5], 4294963200 }
  0x46   :  { %3793 = dma.done.wait [#allocation8], 4160  }
  0x47   :  { %3794 = vsyncadd [#allocation8], 4294963136 }
  0x48   :  { %3795 = dma.done.wait [#allocation11], 4096  }
  0x49   :  { %3796 = vsyncadd [#allocation11], 4294963200  ;;  %v4649_v0 = vmov 0   ;;  %v102_v1 = vld [vmem:[%s4638_s1] sm:$0xff]  ;;  %vm146_vm0 = vcmask 1043456   ;;  %v94_v3 = vld [vmem:[%s4637_s0 + $0x8] sm:$0xff]  ;;  %v106_v59 = vlaneseq }
  0x4a   :  { %191 = vmatprep.mubr.bf16.mxu1 %v4649_v0  ;;  %393 = vmatprep.mubr.bf16.mxu0 %v4649_v0  ;;  %v93_v2 = vld [vmem:[%s4637_s0] sm:$0xff]  ;;  %v3022_v4 = vcombine.high %v102_v1, %v102_v1  ;;  %v3021_v5 = vcombine.low %v102_v1, %v102_v1  ;;  %v103_v6 = vld [vmem:[%s4638_s1 + $0x8] sm:$0xff]  ;;  %vm136_vm1 = vcmask 64512   ;;  %v95_v12 = vld [vmem:[%s4637_s0 + $0x10] sm:$0xff]  ;;  %vm3807_vm2 = vmmov 0  }
  0x4b   :  { %v3024_v7 = vcombine.high %v103_v6, %v103_v6  ;;  %v3023_v8 = vcombine.low %v103_v6, %v103_v6  ;;  %v99_v10 = vpack.c.bf16 %v94_v3, %v93_v2  ;;  %v96_v13 = vld [vmem:[%s4637_s0 + $0x18] sm:$0xff]  ;;  %v97_v15 = vld [vmem:[%s4637_s0 + $0x20] sm:$0xff]  ;;  %v98_v16 = vld [vmem:[%s4637_s0 + $0x28] sm:$0xff]  ;;  %v107_v60 = vshrl.u32 %v106_v59, 7 }
  0x4c   :  { %3025 = vmatprep.subr.msk.bf16.mxu1 %vm146_vm0, %v3022_v4  ;;  %v148_v9 = vsel %vm146_vm0, %v3021_v5, 0  ;;  %v100_v14 = vpack.c.bf16 %v96_v13, %v95_v12  ;;  %v101_v17 = vpack.c.bf16 %v98_v16, %v97_v15  ;;  %v313_v18 = vld [vmem:[%s4641_s4 + $0x8] sm:$0xff]  ;;  %v312_v19 = vld [vmem:[%s4641_s4] sm:$0xff]  ;;  %v311_v28 = vpack.c.bf16 %v98_v16, %v98_v16  ;;  %v104_v62 = vld [vmem:[#allocation7] sm:$0xf] }
  0x4d   :  { %160 = vmatpush1.bf16.msra.mxu1 %v148_v9  ;;  %v154_v11 = vsel %vm146_vm0, %v3023_v8, 0  ;;  %v3037_v20 = vcombine.high %v313_v18, %v313_v18  ;;  %v3036_v21 = vcombine.low %v313_v18, %v313_v18  ;;  %v3035_v22 = vcombine.high %v312_v19, %v312_v19  ;;  %v3994_v26 = vld [vmem:[#allocation4 + $0x4] ss:$16 sps:$4 sm:$0xff]   ;;  %v3996_v27 = vld [vmem:[#allocation4 + $0xc] ss:$16 sps:$4 sm:$0xff]  }
  0x4e   :  { %3029 = vmatprep.subr.msk.bf16.mxu1 %vm146_vm0, %v3024_v7  ;;  %v3034_v23 = vcombine.low %v312_v19, %v312_v19  ;;  %v3998_v29 = vld [vmem:[#allocation4] ss:$16 sps:$4 sm:$0xff]   ;;  %v4000_v30 = vld [vmem:[#allocation4 + $0x8] ss:$16 sps:$4 sm:$0xff]   ;;  %v4008_v31 = vld [vmem:[#allocation4 + $0x24] ss:$16 sps:$4 sm:$0xff]  }
  0x4f   :  { %v356_v24 = vsel %vm146_vm0, %v3036_v21, 0  ;;  %3038 = vmatprep.subr.msk.bf16.mxu0 %vm146_vm0, %v3035_v22  ;;  %v4010_v32 = vld [vmem:[#allocation4 + $0x2c] ss:$16 sps:$4 sm:$0xff]   ;;  %v4012_v33 = vld [vmem:[#allocation4 + $0x20] ss:$16 sps:$4 sm:$0xff]   ;;  %v4096_v61 = vsub.s32 0, %v107_v60 }
  0x50   :  { %3026 = vmatmul.mubr.msk.bf16.vlgmr.msra.gmra.mrb[0].mxu1 %vm136_vm1, %v99_v10  ;;  %v350_v25 = vsel %vm146_vm0, %v3034_v23, 0  ;;  %v4014_v34 = vld [vmem:[#allocation4 + $0x28] ss:$16 sps:$4 sm:$0xff]   ;;  %v4022_v35 = vld [vmem:[#allocation4 + $0x44] ss:$16 sps:$4 sm:$0xff]   ;;  %v4098_v63 = vsub.s32 1, %v107_v60 }
  0x51   :  { %223 = vmatpush1.bf16.msra.mxu1 %v154_v11  ;;  %201 = vmatprep.mubr.bf16.mxu1 %v4649_v0  ;;  %v4024_v36 = vld [vmem:[#allocation4 + $0x4c] ss:$16 sps:$4 sm:$0xff]   ;;  %v4026_v37 = vld [vmem:[#allocation4 + $0x40] ss:$16 sps:$4 sm:$0xff]   ;;  %v4028_v38 = vld [vmem:[#allocation4 + $0x48] ss:$16 sps:$4 sm:$0xff]   ;;  %v109_v1 = vrot.slane %v104_v62, %v4096_v61 }
  0x52   :  { %3040 = vmatprep.subr.msk.bf16.mxu1 %vm146_vm0, %v3037_v20  ;;  %362 = vmatpush1.bf16.msra.mxu0 %v350_v25  ;;  %v4034_v39 = vld [vmem:[#allocation4 + $0x64] ss:$16 sps:$4 sm:$0xff]   ;;  %v4036_v40 = vld [vmem:[#allocation4 + $0x6c] ss:$16 sps:$4 sm:$0xff]   ;;  %v4038_v41 = vld [vmem:[#allocation4 + $0x60] ss:$16 sps:$4 sm:$0xff]   ;;  %v113_v2 = vrot.slane %v104_v62, %v4098_v63 }
  0x53   :  { %674 = vmatprep.subr.bf16.mxu0 %v3994_v26  ;;  %v4040_v42 = vld [vmem:[#allocation4 + $0x68] ss:$16 sps:$4 sm:$0xff]   ;;  %v4046_v43 = vld [vmem:[#allocation4 + $0x84] ss:$16 sps:$4 sm:$0xff]   ;;  %v4048_v44 = vld [vmem:[#allocation4 + $0x8c] ss:$16 sps:$4 sm:$0xff]  }
  0x54   :  { %v4050_v45 = vld [vmem:[#allocation4 + $0x80] ss:$16 sps:$4 sm:$0xff]   ;;  %v4052_v46 = vld [vmem:[#allocation4 + $0x88] ss:$16 sps:$4 sm:$0xff]   ;;  %v4056_v47 = vld [vmem:[#allocation4 + $0xa4] ss:$16 sps:$4 sm:$0xff]  }
  0x55   :  { %3039 = vmatmul.mubr.msk.bf16.vlgmr.msra.gmra.mrb[0].mxu0 %vm136_vm1, %v311_v28  ;;  %v4058_v48 = vld [vmem:[#allocation4 + $0xac] ss:$16 sps:$4 sm:$0xff]   ;;  %v4062_v49 = vld [vmem:[#allocation4 + $0xa0] ss:$16 sps:$4 sm:$0xff]   ;;  %v4064_v50 = vld [vmem:[#allocation4 + $0xa8] ss:$16 sps:$4 sm:$0xff]  }
  0x56   :  { %675 = vmatpush1.bf16.msra.mxu0 %v3998_v29  ;;  %706 = vmatprep.mubr.bf16.mxu0 %v4649_v0  ;;  %v4068_v51 = vld [vmem:[#allocation4 + $0xc4] ss:$16 sps:$4 sm:$0xff]   ;;  %v4070_v52 = vld [vmem:[#allocation4 + $0xcc] ss:$16 sps:$4 sm:$0xff]   ;;  %v4074_v53 = vld [vmem:[#allocation4 + $0xc0] ss:$16 sps:$4 sm:$0xff]  }
  0x57   :  { %676 = vmatprep.subr.bf16.mxu0 %v4008_v31  ;;  %v4076_v54 = vld [vmem:[#allocation4 + $0xc8] ss:$16 sps:$4 sm:$0xff]   ;;  %v4080_v55 = vld [vmem:[#allocation4 + $0xe4] ss:$16 sps:$4 sm:$0xff]   ;;  %v4082_v56 = vld [vmem:[#allocation4 + $0xec] ss:$16 sps:$4 sm:$0xff]  }
  0x58   :  { %3027 = vmatmul.mubr.msk.bf16.gmra.mrb[4].mxu1 %vm136_vm1, %v100_v14  ;;  %v4086_v57 = vld [vmem:[#allocation4 + $0xe0] ss:$16 sps:$4 sm:$0xff]   ;;  %v4088_v58 = vld [vmem:[#allocation4 + $0xe8] ss:$16 sps:$4 sm:$0xff]   ;;  %4659 = vst [vmem:[#allocation17_spill] sm:$0xff] %v4096_v61  ;;  %4660 = vst [vmem:[#allocation18_spill] sm:$0xff] %v4098_v63 }
  0x59   :  { %211 = vmatprep.mubr.bf16.mxu1 %v4649_v0 }
  0x5a   :  { %677 = vmatpush1.bf16.msra.mxu0 %v4012_v33 }
  0x5b   :  { %678 = vmatprep.subr.bf16.mxu0 %v4022_v35 }
  0x5e   :  { %679 = vmatpush1.bf16.msra.mxu0 %v4026_v37 }
  0x5f   :  { %680 = vmatprep.subr.bf16.mxu0 %v4034_v39 }
  0x60   :  { %3028 = vmatmul.mubr.msk.bf16.gmra.mrb[8].mxu1 %vm136_vm1, %v101_v17 }
  0x61   :  { %254 = vmatprep.mubr.bf16.mxu1 %v4649_v0 }
  0x62   :  { %681 = vmatpush1.bf16.msra.mxu0 %v4038_v41 }
  0x63   :  { %682 = vmatprep.subr.bf16.mxu0 %v4046_v43 }
  0x66   :  { %683 = vmatpush1.bf16.msra.mxu0 %v4050_v45 }
  0x67   :  { %684 = vmatprep.subr.bf16.mxu0 %v4056_v47 }
  0x68   :  { %3030 = vmatmul.mubr.msk.bf16.vlgmr.msra.gmra.mrb[12].mxu1 %vm136_vm1, %v99_v10 }
  0x69   :  { %264 = vmatprep.mubr.bf16.mxu1 %v4649_v0  ;;  %403 = vmatpush1.bf16.msra.mxu1 %v356_v24  ;;  %v4116_v24 = vsub.s32 2, %v107_v60 }
  0x6a   :  { %715 = vmatprep.subr.bf16.mxu1 %v3996_v27  ;;  %685 = vmatpush1.bf16.msra.mxu0 %v4062_v49 }
  0x6b   :  { %686 = vmatprep.subr.bf16.mxu0 %v4068_v51  ;;  %4661 = vst [vmem:[#allocation19_spill] sm:$0xff] %v4116_v24 }
  0x6e   :  { %687 = vmatpush1.bf16.msra.mxu0 %v4074_v53 }
  0x6f   :  { %688 = vmatprep.subr.bf16.mxu0 %v4080_v55 }
  0x70   :  { %3031 = vmatmul.mubr.msk.bf16.gmra.mrb[16].mxu1 %vm136_vm1, %v100_v14 }
  0x71   :  { %274 = vmatprep.mubr.bf16.mxu1 %v4649_v0 }
  0x72   :  { %689 = vmatpush1.bf16.msra.mxu0 %v4086_v57 }
  0x73   :  { %790 = vmatprep.subr.bf16.mxu0 %v3994_v26 }
  0x78   :  { %3032 = vmatmul.mubr.msk.bf16.gmra.mrb[20].mxu1 %vm136_vm1, %v101_v17 }
  0x79   :  { %434 = vmatprep.mubr.bf16.mxu1 %v4649_v0 }
  0x80   :  { %3041 = vmatmul.mubr.msk.bf16.vlgmr.msra.gmra.mrb[24].mxu1 %vm136_vm1, %v311_v28 }
  0x81   :  { %716 = vmatpush1.bf16.msra.mxu1 %v4000_v30  ;;  %747 = vmatprep.mubr.bf16.mxu1 %v4649_v0 }
  0x82   :  { %717 = vmatprep.subr.bf16.mxu1 %v4010_v32 }
  0x85   :  { %718 = vmatpush1.bf16.msra.mxu1 %v4014_v34 }
  0x86   :  { %719 = vmatprep.subr.bf16.mxu1 %v4024_v36 }
  0x89   :  { %720 = vmatpush1.bf16.msra.mxu1 %v4028_v38 }
  0x8a   :  { %721 = vmatprep.subr.bf16.mxu1 %v4036_v40 }
  0x8d   :  { %722 = vmatpush1.bf16.msra.mxu1 %v4040_v42 }
  0x8e   :  { %723 = vmatprep.subr.bf16.mxu1 %v4048_v44 }
  0x91   :  { %724 = vmatpush1.bf16.msra.mxu1 %v4052_v46 }
  0x92   :  { %725 = vmatprep.subr.bf16.mxu1 %v4058_v48 }
  0x95   :  { %726 = vmatpush1.bf16.msra.mxu1 %v4064_v50 }
  0x96   :  { %727 = vmatprep.subr.bf16.mxu1 %v4070_v52 }
  0x99   :  { %728 = vmatpush1.bf16.msra.mxu1 %v4076_v54 }
  0x9a   :  { %729 = vmatprep.subr.bf16.mxu1 %v4082_v56 }
  0x9d   :  { %730 = vmatpush1.bf16.msra.mxu1 %v4088_v58 }
  0x9e   :  { %831 = vmatprep.subr.bf16.mxu1 %v3996_v27 }
 0x123   :  { %v193_v3 = vpop.f32.mrb[0].mxu1 }
 0x124   :  { %v194_v4 = vadd.f32 %v193_v3, %v109_v1  ;;  %v195_v5 = vpop.f32.mrb[1].mxu1  ;;  %v4120_v3 = vsub.s32 3, %v107_v60 }
 0x125   :  { %v196_v6 = vadd.f32 %v195_v5, %v113_v2  ;;  %v197_v7 = vpop.f32.mrb[2].mxu1 }
 0x126   :  { %v4102_v8 = vadd.f32 %v197_v7, %v109_v1  ;;  %v199_v9 = vpop.f32.mrb[3].mxu1  ;;  %v3042_v12 = vmul.f32 -1.442695, %v194_v4  ;;  %4663 = vst [vmem:[#allocation21_spill] sm:$0xff] %v4120_v3 }
 0x127   :  { %v3043_v10 = vmul.f32 -1.442695, %v196_v6  ;;  %v4104_v11 = vadd.f32 %v199_v9, %v113_v2 }
 0x129   :  { %3505 = vpow2.f32 %v3043_v10  ;;  %v117_v10 = vrot.slane %v104_v62, %v4116_v24 }
 0x12a   :  { %3507 = vpow2.f32 %v3042_v12 }
 0x12b   :  { %v203_v13 = vpop.f32.mrb[4].mxu1 }
 0x12c   :  { %v4106_v14 = vadd.f32 %v203_v13, %v109_v1  ;;  %v205_v15 = vpop.f32.mrb[5].mxu1  ;;  %v121_v13 = vrot.slane %v104_v62, %v4120_v3 }
 0x12d   :  { %v4108_v16 = vadd.f32 %v205_v15, %v113_v2  ;;  %v207_v17 = vpop.f32.mrb[6].mxu1 }
 0x12e   :  { %v4110_v18 = vadd.f32 %v207_v17, %v109_v1  ;;  %v209_v19 = vpop.f32.mrb[7].mxu1 }
 0x12f   :  { %v4112_v20 = vadd.f32 %v209_v19, %v113_v2 }
 0x133   :  { %v213_v21 = vpop.f32.mrb[8].mxu1  ;;  %v3506_v25 = vpop.eup %3505 }
 0x134   :  { %v4114_v22 = vadd.f32 %v213_v21, %v109_v1  ;;  %v215_v23 = vpop.f32.mrb[9].mxu1  ;;  %v3508_v4 = vpop.eup %3507  ;;  %v461_v9 = vadd.f32 1.0, %v3506_v25 }
 0x135   :  { %v4118_v28 = vadd.f32 %v215_v23, %v113_v2  ;;  %v217_v59 = vpop.f32.mrb[10].mxu1  ;;  %v455_v12 = vadd.f32 1.0, %v3508_v4 }
 0x136   :  { %v4122_v5 = vadd.f32 %v217_v59, %v109_v1  ;;  %v219_v6 = vpop.f32.mrb[11].mxu1  ;;  %3509 = vrcp.f32 %v461_v9 }
 0x137   :  { %4662 = vst [vmem:[#allocation20_spill] sm:$0xff] %v4118_v28  ;;  %v4124_v7 = vadd.f32 %v219_v6, %v113_v2  ;;  %3511 = vrcp.f32 %v455_v12 }
 0x138   :  { %4664 = vst [vmem:[#allocation22_spill] sm:$0xff] %v4122_v5 }
 0x139   :  { %4665 = vst [vmem:[#allocation23_spill] sm:$0xff] %v4124_v7 }
 0x13b   :  { %v256_v15 = vpop.f32.mrb[12].mxu1 }
 0x13c   :  { %v257_v17 = vadd.f32 %v256_v15, %v117_v10  ;;  %v258_v19 = vpop.f32.mrb[13].mxu1 }
 0x13d   :  { %v259_v21 = vadd.f32 %v258_v19, %v121_v13  ;;  %v260_v60 = vpop.f32.mrb[14].mxu1 }
 0x13e   :  { %3513 = vtanh.f32 %v257_v17  ;;  %v4128_v23 = vadd.f32 %v260_v60, %v117_v10  ;;  %v262_v1 = vpop.f32.mrb[15].mxu1 }
 0x13f   :  { %v3044_v59 = vmul.f32 -1.442695, %v259_v21  ;;  %v4130_v2 = vadd.f32 %v262_v1, %v121_v13 }
 0x140   :  { %v3510_v15 = vpop.eup %3509 }
 0x141   :  { %3515 = vpow2.f32 %v3044_v59  ;;  %v3512_v19 = vpop.eup %3511  ;;  %v471_v24 = vmul.f32 0.0, %v3510_v15 }
 0x143   :  { %v266_v25 = vpop.f32.mrb[16].mxu1 }
 0x144   :  { %v4132_v6 = vadd.f32 %v266_v25, %v117_v10  ;;  %v268_v4 = vpop.f32.mrb[17].mxu1 }
 0x145   :  { %v4134_v62 = vadd.f32 %v268_v4, %v121_v13  ;;  %v270_v9 = vpop.f32.mrb[18].mxu1 }
 0x146   :  { %v4136_v0 = vadd.f32 %v270_v9, %v117_v10  ;;  %v272_v12 = vpop.f32.mrb[19].mxu1 }
 0x147   :  { %v4138_v17 = vadd.f32 %v272_v12, %v121_v13 }
 0x148   :  { %v3514_v60 = vpop.eup %3513 }
 0x149   :  { %v472_v21 = vmul.f32 %v3514_v60, %v3512_v19 }
 0x14b   :  { %v3516_v1 = vpop.eup %3515  ;;  %v4140_v3 = vadd.f32 %v472_v21, %v471_v24  ;;  %v276_v59 = vpop.f32.mrb[20].mxu1  ;;  %v4670_v21 = vmov 0  }
 0x14c   :  { %v468_v25 = vadd.f32 1.0, %v3516_v1  ;;  %v4142_v63 = vadd.f32 %v276_v59, %v117_v10  ;;  %v278_v4 = vpop.f32.mrb[21].mxu1 }
 0x14d   :  { %3517 = vtanh.f32 %v4140_v3  ;;  %v4145_v61 = vadd.f32 %v278_v4, %v121_v13  ;;  %v280_v9 = vpop.f32.mrb[22].mxu1 }
 0x14e   :  { %4666 = vst [vmem:[#allocation24_spill] sm:$0xff] %v4142_v63  ;;  %3519 = vrcp.f32 %v468_v25  ;;  %v4147_v7 = vadd.f32 %v280_v9, %v117_v10  ;;  %v282_v12 = vpop.f32.mrb[23].mxu1 }
 0x14f   :  { %4667 = vst [vmem:[#allocation25_spill] sm:$0xff] %v4145_v61  ;;  %v4149_v5 = vadd.f32 %v282_v12, %v121_v13 }
 0x150   :  { %4668 = vst [vmem:[#allocation26_spill] sm:$0xff] %v4147_v7 }
 0x151   :  { %4669 = vst [vmem:[#allocation27_spill] sm:$0xff] %v4149_v5 }
 0x157   :  { %v3518_v15 = vpop.eup %3517 }
 0x158   :  { %v3520_v19 = vpop.eup %3519 }
 0x159   :  { %v475_v24 = vmul.f32 %v3520_v19, %v3518_v15 }
 0x15b   :  { %v481_v60 = vpack.c.bf16 %v475_v24, %v475_v24 }
 0x15d   :  { %707 = vmatmul.mubr.bf16.vlgmr.msra.gmra.mrb[4].mxu0 %v481_v60  ;;  %748 = vmatmul.mubr.bf16.vlgmr.msra.gmra.mrb[28].mxu1 %v481_v60 }
 0x15e   :  { %791 = vmatpush1.bf16.msra.mxu0 %v3998_v29  ;;  %832 = vmatpush1.bf16.msra.mxu1 %v4000_v30 }
 0x15f   :  { %792 = vmatprep.subr.bf16.mxu0 %v4008_v31  ;;  %833 = vmatprep.subr.bf16.mxu1 %v4010_v32 }
 0x160   :  { %822 = vmatprep.mubr.bf16.mxu0 %v4670_v21  ;;  %863 = vmatprep.mubr.bf16.mxu1 %v4670_v21 }
 0x162   :  { %793 = vmatpush1.bf16.msra.mxu0 %v4012_v33  ;;  %834 = vmatpush1.bf16.msra.mxu1 %v4014_v34 }
 0x163   :  { %794 = vmatprep.subr.bf16.mxu0 %v4022_v35  ;;  %835 = vmatprep.subr.bf16.mxu1 %v4024_v36 }
 0x166   :  { %795 = vmatpush1.bf16.msra.mxu0 %v4026_v37  ;;  %836 = vmatpush1.bf16.msra.mxu1 %v4028_v38 }
 0x167   :  { %796 = vmatprep.subr.bf16.mxu0 %v4034_v39  ;;  %837 = vmatprep.subr.bf16.mxu1 %v4036_v40 }
 0x16a   :  { %797 = vmatpush1.bf16.msra.mxu0 %v4038_v41  ;;  %838 = vmatpush1.bf16.msra.mxu1 %v4040_v42 }
 0x16b   :  { %798 = vmatprep.subr.bf16.mxu0 %v4046_v43  ;;  %839 = vmatprep.subr.bf16.mxu1 %v4048_v44 }
 0x16e   :  { %799 = vmatpush1.bf16.msra.mxu0 %v4050_v45  ;;  %840 = vmatpush1.bf16.msra.mxu1 %v4052_v46 }
 0x16f   :  { %800 = vmatprep.subr.bf16.mxu0 %v4056_v47  ;;  %841 = vmatprep.subr.bf16.mxu1 %v4058_v48 }
 0x172   :  { %801 = vmatpush1.bf16.msra.mxu0 %v4062_v49  ;;  %842 = vmatpush1.bf16.msra.mxu1 %v4064_v50 }
 0x173   :  { %802 = vmatprep.subr.bf16.mxu0 %v4068_v51  ;;  %843 = vmatprep.subr.bf16.mxu1 %v4070_v52 }
 0x176   :  { %803 = vmatpush1.bf16.msra.mxu0 %v4074_v53  ;;  %844 = vmatpush1.bf16.msra.mxu1 %v4076_v54 }
 0x177   :  { %804 = vmatprep.subr.bf16.mxu0 %v4080_v55  ;;  %845 = vmatprep.subr.bf16.mxu1 %v4082_v56 }
 0x17a   :  { %805 = vmatpush1.bf16.msra.mxu0 %v4086_v57  ;;  %846 = vmatpush1.bf16.msra.mxu1 %v4088_v58 }
 0x17b   :  { %906 = vmatprep.subr.bf16.mxu0 %v3994_v26  ;;  %947 = vmatprep.subr.bf16.mxu1 %v3996_v27 }
 0x230   :  { %v708_v10 = vpop.f32.mrb[4].mxu0  ;;  %v749_v13 = vpop.f32.mrb[28].mxu1 }
 0x231   :  { %v756_v1 = vadd.f32 %v708_v10, %v4102_v8  ;;  %v758_v59 = vadd.f32 %v749_v13, %v4128_v23  ;;  %v710_v25 = vpop.f32.mrb[5].mxu0  ;;  %v751_v4 = vpop.f32.mrb[29].mxu1 }
 0x232   :  { %v757_v9 = vadd.f32 %v710_v25, %v4104_v11  ;;  %v759_v12 = vadd.f32 %v751_v4, %v4130_v2  ;;  %v712_v15 = vpop.f32.mrb[6].mxu0  ;;  %v753_v19 = vpop.f32.mrb[30].mxu1 }
 0x233   :  { %v3077_v24 = vmul.f32 -1.442695, %v756_v1  ;;  %v713_v60 = vpop.f32.mrb[7].mxu0  ;;  %v754_v5 = vpop.f32.mrb[31].mxu1 }
 0x234   :  { %v3078_v7 = vmul.f32 -1.442695, %v757_v9  ;;  %v3079_v61 = vmul.f32 -1.442695, %v759_v12 }
 0x235   :  { %3521 = vpow2.f32 %v3077_v24 }
 0x236   :  { %3523 = vpow2.f32 %v3078_v7 }
 0x237   :  { %3525 = vpow2.f32 %v3079_v61 }
 0x238   :  { %3527 = vtanh.f32 %v758_v59 }
 0x23f   :  { %v3522_v28 = vpop.eup %3521 }
 0x240   :  { %v3524_v63 = vpop.eup %3523  ;;  %v763_v8 = vadd.f32 1.0, %v3522_v28 }
 0x241   :  { %v769_v23 = vadd.f32 1.0, %v3524_v63  ;;  %v3526_v11 = vpop.eup %3525 }
 0x242   :  { %3529 = vrcp.f32 %v763_v8  ;;  %v3528_v10 = vpop.eup %3527  ;;  %v776_v1 = vadd.f32 1.0, %v3526_v11 }
 0x243   :  { %3531 = vrcp.f32 %v769_v23 }
 0x244   :  { %3533 = vrcp.f32 %v776_v1 }
 0x24c   :  { %v3530_v2 = vpop.eup %3529 }
 0x24d   :  { %v3532_v13 = vpop.eup %3531  ;;  %v780_v25 = vmul.f32 %v3530_v2, %v3528_v10 }
 0x24e   :  { %v779_v5 = vmul.f32 %v3532_v13, %v4140_v3  ;;  %v3534_v7 = vpop.eup %3533 }
 0x250   :  { %v4190_v4 = vadd.f32 %v780_v25, %v779_v5 }
 0x252   :  { %3535 = vtanh.f32 %v4190_v4 }
 0x25c   :  { %v3536_v28 = vpop.eup %3535 }
 0x25d   :  { %v783_v61 = vmul.f32 %v3536_v28, %v3534_v7 }
 0x25f   :  { %v789_v59 = vpack.c.bf16 %v783_v61, %v783_v61 }
 0x261   :  { %823 = vmatmul.mubr.bf16.vlgmr.msra.gmra.mrb[8].mxu0 %v789_v59  ;;  %864 = vmatmul.mubr.bf16.vlgmr.msra.gmra.mrb[32].mxu1 %v789_v59 }
 0x262   :  { %907 = vmatpush1.bf16.msra.mxu0 %v3998_v29  ;;  %948 = vmatpush1.bf16.msra.mxu1 %v4000_v30 }
 0x263   :  { %908 = vmatprep.subr.bf16.mxu0 %v4008_v31  ;;  %949 = vmatprep.subr.bf16.mxu1 %v4010_v32 }
 0x264   :  { %938 = vmatprep.mubr.bf16.mxu0 %v4670_v21  ;;  %979 = vmatprep.mubr.bf16.mxu1 %v4670_v21 }
 0x266   :  { %909 = vmatpush1.bf16.msra.mxu0 %v4012_v33  ;;  %950 = vmatpush1.bf16.msra.mxu1 %v4014_v34 }
 0x267   :  { %910 = vmatprep.subr.bf16.mxu0 %v4022_v35  ;;  %951 = vmatprep.subr.bf16.mxu1 %v4024_v36 }
 0x26a   :  { %911 = vmatpush1.bf16.msra.mxu0 %v4026_v37  ;;  %952 = vmatpush1.bf16.msra.mxu1 %v4028_v38 }
 0x26b   :  { %912 = vmatprep.subr.bf16.mxu0 %v4034_v39  ;;  %953 = vmatprep.subr.bf16.mxu1 %v4036_v40 }
 0x26e   :  { %913 = vmatpush1.bf16.msra.mxu0 %v4038_v41  ;;  %954 = vmatpush1.bf16.msra.mxu1 %v4040_v42 }
 0x26f   :  { %914 = vmatprep.subr.bf16.mxu0 %v4046_v43  ;;  %955 = vmatprep.subr.bf16.mxu1 %v4048_v44 }
 0x272   :  { %915 = vmatpush1.bf16.msra.mxu0 %v4050_v45  ;;  %956 = vmatpush1.bf16.msra.mxu1 %v4052_v46 }
 0x273   :  { %916 = vmatprep.subr.bf16.mxu0 %v4056_v47  ;;  %957 = vmatprep.subr.bf16.mxu1 %v4058_v48 }
 0x276   :  { %917 = vmatpush1.bf16.msra.mxu0 %v4062_v49  ;;  %958 = vmatpush1.bf16.msra.mxu1 %v4064_v50 }
 0x277   :  { %918 = vmatprep.subr.bf16.mxu0 %v4068_v51  ;;  %959 = vmatprep.subr.bf16.mxu1 %v4070_v52 }
 0x27a   :  { %919 = vmatpush1.bf16.msra.mxu0 %v4074_v53  ;;  %960 = vmatpush1.bf16.msra.mxu1 %v4076_v54 }
 0x27b   :  { %920 = vmatprep.subr.bf16.mxu0 %v4080_v55  ;;  %961 = vmatprep.subr.bf16.mxu1 %v4082_v56 }
 0x27e   :  { %921 = vmatpush1.bf16.msra.mxu0 %v4086_v57  ;;  %962 = vmatpush1.bf16.msra.mxu1 %v4088_v58 }
 0x27f   :  { %1022 = vmatprep.subr.bf16.mxu0 %v3994_v26  ;;  %1063 = vmatprep.subr.bf16.mxu1 %v3996_v27 }
 0x334   :  { %v824_v63 = vpop.f32.mrb[8].mxu0  ;;  %v865_v3 = vpop.f32.mrb[32].mxu1 }
 0x335   :  { %v872_v9 = vadd.f32 %v824_v63, %v4106_v14  ;;  %v874_v12 = vadd.f32 %v865_v3, %v4132_v6  ;;  %v826_v15 = vpop.f32.mrb[9].mxu0  ;;  %v867_v19 = vpop.f32.mrb[33].mxu1 }
 0x336   :  { %v873_v24 = vadd.f32 %v826_v15, %v4108_v16  ;;  %v875_v60 = vadd.f32 %v867_v19, %v4134_v62  ;;  %v828_v8 = vpop.f32.mrb[10].mxu0  ;;  %v869_v23 = vpop.f32.mrb[34].mxu1 }
 0x337   :  { %v3080_v11 = vmul.f32 -1.442695, %v872_v9  ;;  %v829_v10 = vpop.f32.mrb[11].mxu0  ;;  %v870_v2 = vpop.f32.mrb[35].mxu1 }
 0x338   :  { %v3081_v13 = vmul.f32 -1.442695, %v873_v24  ;;  %v3082_v25 = vmul.f32 -1.442695, %v875_v60 }
 0x339   :  { %3537 = vpow2.f32 %v3080_v11 }
 0x33a   :  { %3539 = vpow2.f32 %v3081_v13 }
 0x33b   :  { %3541 = vpow2.f32 %v3082_v25 }
 0x33c   :  { %3543 = vtanh.f32 %v874_v12 }
 0x343   :  { %v3538_v1 = vpop.eup %3537 }
 0x344   :  { %v3540_v5 = vpop.eup %3539  ;;  %v879_v14 = vadd.f32 1.0, %v3538_v1 }
 0x345   :  { %v885_v6 = vadd.f32 1.0, %v3540_v5  ;;  %v3542_v16 = vpop.eup %3541 }
 0x346   :  { %3545 = vrcp.f32 %v879_v14  ;;  %v3544_v7 = vpop.eup %3543  ;;  %v892_v59 = vadd.f32 1.0, %v3542_v16 }
 0x347   :  { %3547 = vrcp.f32 %v885_v6 }
 0x348   :  { %3549 = vrcp.f32 %v892_v59 }
 0x350   :  { %v3546_v62 = vpop.eup %3545 }
 0x351   :  { %v3548_v28 = vpop.eup %3547  ;;  %v896_v61 = vmul.f32 %v3546_v62, %v3544_v7 }
 0x352   :  { %v895_v63 = vmul.f32 %v3548_v28, %v4190_v4  ;;  %v3550_v9 = vpop.eup %3549 }
 0x354   :  { %v4232_v3 = vadd.f32 %v896_v61, %v895_v63 }
 0x356   :  { %3551 = vtanh.f32 %v4232_v3 }
 0x360   :  { %v3552_v15 = vpop.eup %3551 }
 0x361   :  { %v899_v19 = vmul.f32 %v3552_v15, %v3550_v9 }
 0x363   :  { %v905_v12 = vpack.c.bf16 %v899_v19, %v899_v19 }
 0x365   :  { %939 = vmatmul.mubr.bf16.vlgmr.msra.gmra.mrb[12].mxu0 %v905_v12  ;;  %980 = vmatmul.mubr.bf16.vlgmr.msra.gmra.mrb[36].mxu1 %v905_v12 }
 0x366   :  { %1023 = vmatpush1.bf16.msra.mxu0 %v3998_v29  ;;  %1064 = vmatpush1.bf16.msra.mxu1 %v4000_v30 }
 0x367   :  { %1024 = vmatprep.subr.bf16.mxu0 %v4008_v31  ;;  %1065 = vmatprep.subr.bf16.mxu1 %v4010_v32 }
 0x368   :  { %1054 = vmatprep.mubr.bf16.mxu0 %v4670_v21  ;;  %1095 = vmatprep.mubr.bf16.mxu1 %v4670_v21 }
 0x36a   :  { %1025 = vmatpush1.bf16.msra.mxu0 %v4012_v33  ;;  %1066 = vmatpush1.bf16.msra.mxu1 %v4014_v34 }
 0x36b   :  { %1026 = vmatprep.subr.bf16.mxu0 %v4022_v35  ;;  %1067 = vmatprep.subr.bf16.mxu1 %v4024_v36 }
 0x36e   :  { %1027 = vmatpush1.bf16.msra.mxu0 %v4026_v37  ;;  %1068 = vmatpush1.bf16.msra.mxu1 %v4028_v38 }
 0x36f   :  { %1028 = vmatprep.subr.bf16.mxu0 %v4034_v39  ;;  %1069 = vmatprep.subr.bf16.mxu1 %v4036_v40 }
 0x372   :  { %1029 = vmatpush1.bf16.msra.mxu0 %v4038_v41  ;;  %1070 = vmatpush1.bf16.msra.mxu1 %v4040_v42 }
 0x373   :  { %1030 = vmatprep.subr.bf16.mxu0 %v4046_v43  ;;  %1071 = vmatprep.subr.bf16.mxu1 %v4048_v44 }
 0x376   :  { %1031 = vmatpush1.bf16.msra.mxu0 %v4050_v45  ;;  %1072 = vmatpush1.bf16.msra.mxu1 %v4052_v46 }
 0x377   :  { %1032 = vmatprep.subr.bf16.mxu0 %v4056_v47  ;;  %1073 = vmatprep.subr.bf16.mxu1 %v4058_v48 }
 0x37a   :  { %1033 = vmatpush1.bf16.msra.mxu0 %v4062_v49  ;;  %1074 = vmatpush1.bf16.msra.mxu1 %v4064_v50 }
 0x37b   :  { %1034 = vmatprep.subr.bf16.mxu0 %v4068_v51  ;;  %1075 = vmatprep.subr.bf16.mxu1 %v4070_v52 }
 0x37e   :  { %1035 = vmatpush1.bf16.msra.mxu0 %v4074_v53  ;;  %1076 = vmatpush1.bf16.msra.mxu1 %v4076_v54 }
 0x37f   :  { %1036 = vmatprep.subr.bf16.mxu0 %v4080_v55  ;;  %1077 = vmatprep.subr.bf16.mxu1 %v4082_v56 }
 0x382   :  { %1037 = vmatpush1.bf16.msra.mxu0 %v4086_v57  ;;  %1078 = vmatpush1.bf16.msra.mxu1 %v4088_v58 }
 0x383   :  { %1138 = vmatprep.subr.bf16.mxu0 %v3994_v26  ;;  %1179 = vmatprep.subr.bf16.mxu1 %v3996_v27 }
 0x438   :  { %v940_v4 = vpop.f32.mrb[12].mxu0  ;;  %v981_v24 = vpop.f32.mrb[36].mxu1 }
 0x439   :  { %v988_v60 = vadd.f32 %v940_v4, %v4110_v18  ;;  %v990_v8 = vadd.f32 %v981_v24, %v4136_v0  ;;  %v942_v23 = vpop.f32.mrb[13].mxu0  ;;  %v983_v11 = vpop.f32.mrb[37].mxu1 }
 0x43a   :  { %v989_v10 = vadd.f32 %v942_v23, %v4112_v20  ;;  %v991_v2 = vadd.f32 %v983_v11, %v4138_v17  ;;  %v944_v13 = vpop.f32.mrb[14].mxu0  ;;  %v985_v25 = vpop.f32.mrb[38].mxu1  ;;  %v3398_v23 = vld [vmem:[#allocation9] ss:$16 sps:$4 sm:$0xff]   ;;  %v3401_v11 = vld [vmem:[#allocation9 + $0x8] ss:$16 sps:$4 sm:$0xff]  }
 0x43b   :  { %v3083_v1 = vmul.f32 -1.442695, %v988_v60  ;;  %v945_v5 = vpop.f32.mrb[15].mxu0  ;;  %v986_v14 = vpop.f32.mrb[39].mxu1  ;;  %v3400_v60 = vld [vmem:[#allocation9 + $0x4] ss:$16 sps:$4 sm:$0xff]  }
 0x43c   :  { %v3084_v26 = vmul.f32 -1.442695, %v989_v10  ;;  %v3085_v27 = vmul.f32 -1.442695, %v991_v2  ;;  %v3406_v10 = vld [vmem:[#allocation9 + $0x24] ss:$16 sps:$4 sm:$0xff]  }
 0x43d   :  { %3553 = vpow2.f32 %v3083_v1  ;;  %v3409_v2 = vld [vmem:[#allocation9 + $0x2c] ss:$16 sps:$4 sm:$0xff]   ;;  %v3404_v13 = vld [vmem:[#allocation9 + $0x20] ss:$16 sps:$4 sm:$0xff]   ;;  %v3407_v25 = vld [vmem:[#allocation9 + $0x28] ss:$16 sps:$4 sm:$0xff]  }
 0x43e   :  { %3555 = vpow2.f32 %v3084_v26  ;;  %v3412_v1 = vld [vmem:[#allocation9 + $0x44] ss:$16 sps:$4 sm:$0xff]   ;;  %v3415_v5 = vld [vmem:[#allocation9 + $0x4c] ss:$16 sps:$4 sm:$0xff]   ;;  %v3410_v14 = vld [vmem:[#allocation9 + $0x40] ss:$16 sps:$4 sm:$0xff]  }
 0x43f   :  { %3557 = vpow2.f32 %v3085_v27  ;;  %v3413_v26 = vld [vmem:[#allocation9 + $0x48] ss:$16 sps:$4 sm:$0xff]   ;;  %v3418_v27 = vld [vmem:[#allocation9 + $0x64] ss:$16 sps:$4 sm:$0xff]  }
 0x440   :  { %3559 = vtanh.f32 %v990_v8  ;;  %v3403_v8 = vld [vmem:[#allocation9 + $0xc] ss:$16 sps:$4 sm:$0xff]  }
 0x447   :  { %v3554_v6 = vpop.eup %3553 }
 0x448   :  { %v3556_v16 = vpop.eup %3555  ;;  %v995_v18 = vadd.f32 1.0, %v3554_v6  ;;  %v3421_v6 = vld [vmem:[#allocation9 + $0x6c] ss:$16 sps:$4 sm:$0xff]  }
 0x449   :  { %v1001_v0 = vadd.f32 1.0, %v3556_v16  ;;  %v3558_v20 = vpop.eup %3557  ;;  %v3416_v16 = vld [vmem:[#allocation9 + $0x60] ss:$16 sps:$4 sm:$0xff]  }
 0x44a   :  { %3561 = vrcp.f32 %v995_v18  ;;  %v3560_v7 = vpop.eup %3559  ;;  %v1008_v61 = vadd.f32 1.0, %v3558_v20  ;;  %v3419_v18 = vld [vmem:[#allocation9 + $0x68] ss:$16 sps:$4 sm:$0xff]   ;;  %v3424_v20 = vld [vmem:[#allocation9 + $0x84] ss:$16 sps:$4 sm:$0xff]  }
 0x44b   :  { %3563 = vrcp.f32 %v1001_v0  ;;  %v3422_v0 = vld [vmem:[#allocation9 + $0x80] ss:$16 sps:$4 sm:$0xff]  }
 0x44c   :  { %3565 = vrcp.f32 %v1008_v61  ;;  %v3428_v61 = vld [vmem:[#allocation9 + $0xa0] ss:$16 sps:$4 sm:$0xff]  }
 0x454   :  { %v3562_v17 = vpop.eup %3561 }
 0x455   :  { %v3564_v62 = vpop.eup %3563  ;;  %v1012_v28 = vmul.f32 %v3562_v17, %v3560_v7  ;;  %v3425_v7 = vld [vmem:[#allocation9 + $0x88] ss:$16 sps:$4 sm:$0xff]   ;;  %v3427_v17 = vld [vmem:[#allocation9 + $0x8c] ss:$16 sps:$4 sm:$0xff]  }
 0x456   :  { %v1011_v59 = vmul.f32 %v3564_v62, %v4232_v3  ;;  %v3566_v9 = vpop.eup %3565  ;;  %v3430_v62 = vld [vmem:[#allocation9 + $0xa4] ss:$16 sps:$4 sm:$0xff]  }
 0x458   :  { %v4274_v63 = vadd.f32 %v1012_v28, %v1011_v59  ;;  %v3433_v28 = vld [vmem:[#allocation9 + $0xac] ss:$16 sps:$4 sm:$0xff]   ;;  %v3431_v59 = vld [vmem:[#allocation9 + $0xa8] ss:$16 sps:$4 sm:$0xff]  }
 0x45a   :  { %3567 = vtanh.f32 %v4274_v63 }
 0x464   :  { %v3568_v15 = vpop.eup %3567 }
 0x465   :  { %v1015_v19 = vmul.f32 %v3568_v15, %v3566_v9  ;;  %v3439_v9 = vld [vmem:[#allocation9 + $0xcc] ss:$16 sps:$4 sm:$0xff]   ;;  %v3434_v15 = vld [vmem:[#allocation9 + $0xc0] ss:$16 sps:$4 sm:$0xff]  }
 0x467   :  { %v1021_v12 = vpack.c.bf16 %v1015_v19, %v1015_v19  ;;  %v3437_v19 = vld [vmem:[#allocation9 + $0xc8] ss:$16 sps:$4 sm:$0xff]  }
 0x469   :  { %1055 = vmatmul.mubr.bf16.vlgmr.msra.gmra.mrb[16].mxu0 %v1021_v12  ;;  %1096 = vmatmul.mubr.bf16.vlgmr.msra.gmra.mrb[40].mxu1 %v1021_v12  ;;  %v3442_v12 = vld [vmem:[#allocation9 + $0xe4] ss:$16 sps:$4 sm:$0xff]  }
 0x46a   :  { %1139 = vmatpush1.bf16.msra.mxu0 %v3998_v29  ;;  %1180 = vmatpush1.bf16.msra.mxu1 %v4000_v30 }
 0x46b   :  { %1140 = vmatprep.subr.bf16.mxu0 %v4008_v31  ;;  %1181 = vmatprep.subr.bf16.mxu1 %v4010_v32  ;;  %v4671_v32 = vld [vmem:[#allocation24_spill] sm:$0xff] }
 0x46c   :  { %1170 = vmatprep.mubr.bf16.mxu0 %v4670_v21  ;;  %1211 = vmatprep.mubr.bf16.mxu1 %v4670_v21 }
 0x46e   :  { %1141 = vmatpush1.bf16.msra.mxu0 %v4012_v33  ;;  %1182 = vmatpush1.bf16.msra.mxu1 %v4014_v34 }
 0x46f   :  { %1142 = vmatprep.subr.bf16.mxu0 %v4022_v35  ;;  %1183 = vmatprep.subr.bf16.mxu1 %v4024_v36  ;;  %v4672_v36 = vld [vmem:[#allocation20_spill] sm:$0xff] }
 0x472   :  { %1143 = vmatpush1.bf16.msra.mxu0 %v4026_v37  ;;  %1184 = vmatpush1.bf16.msra.mxu1 %v4028_v38  ;;  %v4673_v38 = vld [vmem:[#allocation25_spill] sm:$0xff] }
 0x473   :  { %1144 = vmatprep.subr.bf16.mxu0 %v4034_v39  ;;  %1185 = vmatprep.subr.bf16.mxu1 %v4036_v40 }
 0x476   :  { %1145 = vmatpush1.bf16.msra.mxu0 %v4038_v41  ;;  %1186 = vmatpush1.bf16.msra.mxu1 %v4040_v42 }
 0x477   :  { %1146 = vmatprep.subr.bf16.mxu0 %v4046_v43  ;;  %1187 = vmatprep.subr.bf16.mxu1 %v4048_v44 }
 0x47a   :  { %1147 = vmatpush1.bf16.msra.mxu0 %v4050_v45  ;;  %1188 = vmatpush1.bf16.msra.mxu1 %v4052_v46 }
 0x47b   :  { %1148 = vmatprep.subr.bf16.mxu0 %v4056_v47  ;;  %1189 = vmatprep.subr.bf16.mxu1 %v4058_v48 }
 0x47e   :  { %1149 = vmatpush1.bf16.msra.mxu0 %v4062_v49  ;;  %1190 = vmatpush1.bf16.msra.mxu1 %v4064_v50 }
 0x47f   :  { %1150 = vmatprep.subr.bf16.mxu0 %v4068_v51  ;;  %1191 = vmatprep.subr.bf16.mxu1 %v4070_v52 }
 0x482   :  { %1151 = vmatpush1.bf16.msra.mxu0 %v4074_v53  ;;  %1192 = vmatpush1.bf16.msra.mxu1 %v4076_v54 }
 0x483   :  { %1152 = vmatprep.subr.bf16.mxu0 %v4080_v55  ;;  %1193 = vmatprep.subr.bf16.mxu1 %v4082_v56 }
 0x486   :  { %1153 = vmatpush1.bf16.msra.mxu0 %v4086_v57  ;;  %1194 = vmatpush1.bf16.msra.mxu1 %v4088_v58 }
 0x487   :  { %1445 = vmatprep.subr.bf16.mxu0 %v3400_v60  ;;  %1486 = vmatprep.subr.bf16.mxu1 %v3403_v8 }
 0x53c   :  { %v1056_v29 = vpop.f32.mrb[16].mxu0  ;;  %v1097_v30 = vpop.f32.mrb[40].mxu1 }
 0x53d   :  { %v1104_v31 = vadd.f32 %v1056_v29, %v4114_v22  ;;  %v1106_v33 = vadd.f32 %v1097_v30, %v4671_v32  ;;  %v1058_v34 = vpop.f32.mrb[17].mxu0  ;;  %v1099_v35 = vpop.f32.mrb[41].mxu1  ;;  %v3445_v29 = vld [vmem:[#allocation9 + $0xec] ss:$16 sps:$4 sm:$0xff]   ;;  %v3440_v30 = vld [vmem:[#allocation9 + $0xe0] ss:$16 sps:$4 sm:$0xff]  }
 0x53e   :  { %v1105_v37 = vadd.f32 %v1058_v34, %v4672_v36  ;;  %v1107_v39 = vadd.f32 %v1099_v35, %v4673_v38  ;;  %v1060_v40 = vpop.f32.mrb[18].mxu0  ;;  %v1101_v41 = vpop.f32.mrb[42].mxu1  ;;  %v4674_v34 = vld [vmem:[#allocation22_spill] sm:$0xff] }
 0x53f   :  { %v3086_v42 = vmul.f32 -1.442695, %v1104_v31  ;;  %v1061_v43 = vpop.f32.mrb[19].mxu0  ;;  %v1102_v44 = vpop.f32.mrb[43].mxu1  ;;  %v3443_v31 = vld [vmem:[#allocation9 + $0xe8] ss:$16 sps:$4 sm:$0xff]  }
 0x540   :  { %v3087_v45 = vmul.f32 -1.442695, %v1105_v37  ;;  %v3088_v46 = vmul.f32 -1.442695, %v1107_v39  ;;  %v4675_v36 = vld [vmem:[#allocation26_spill] sm:$0xff]  ;;  %v4676_v40 = vld [vmem:[#allocation23_spill] sm:$0xff] }
 0x541   :  { %3569 = vpow2.f32 %v3086_v42  ;;  %v4677_v42 = vld [vmem:[#allocation27_spill] sm:$0xff] }
 0x542   :  { %3571 = vpow2.f32 %v3087_v45 }
 0x543   :  { %3573 = vpow2.f32 %v3088_v46 }
 0x544   :  { %3575 = vtanh.f32 %v1106_v33 }
 0x54b   :  { %v3570_v47 = vpop.eup %3569 }
 0x54c   :  { %v3572_v48 = vpop.eup %3571  ;;  %v1111_v49 = vadd.f32 1.0, %v3570_v47 }
 0x54d   :  { %v1117_v50 = vadd.f32 1.0, %v3572_v48  ;;  %v3574_v51 = vpop.eup %3573 }
 0x54e   :  { %3577 = vrcp.f32 %v1111_v49  ;;  %v3576_v52 = vpop.eup %3575  ;;  %v1124_v56 = vadd.f32 1.0, %v3574_v51 }
 0x54f   :  { %3579 = vrcp.f32 %v1117_v50 }
 0x550   :  { %3581 = vrcp.f32 %v1124_v56 }
 0x558   :  { %v3578_v53 = vpop.eup %3577 }
 0x559   :  { %v3580_v54 = vpop.eup %3579  ;;  %v1128_v55 = vmul.f32 %v3578_v53, %v3576_v52 }
 0x55a   :  { %v1127_v57 = vmul.f32 %v3580_v54, %v4274_v63  ;;  %v3582_v22 = vpop.eup %3581  ;;  %v3436_v63 = vld [vmem:[#allocation9 + $0xc4] ss:$16 sps:$4 sm:$0xff]  }
 0x55c   :  { %v4314_v58 = vadd.f32 %v1128_v55, %v1127_v57 }
 0x55e   :  { %3583 = vtanh.f32 %v4314_v58 }
 0x568   :  { %v3584_v3 = vpop.eup %3583 }
 0x569   :  { %v1131_v4 = vmul.f32 %v3584_v3, %v3582_v22 }
 0x56b   :  { %v1137_v24 = vpack.c.bf16 %v1131_v4, %v1131_v4 }
 0x56d   :  { %1171 = vmatmul.mubr.bf16.vlgmr.msra.gmra.mrb[20].mxu0 %v1137_v24  ;;  %1212 = vmatmul.mubr.bf16.vlgmr.msra.gmra.mrb[44].mxu1 %v1137_v24 }
 0x56e   :  { %1477 = vmatprep.mubr.bf16.mxu0 %v4670_v21  ;;  %1518 = vmatprep.mubr.bf16.mxu1 %v4670_v21 }
 0x56f   :  { %1446 = vmatpush1.bf16.msra.mxu0 %v3398_v23  ;;  %1487 = vmatpush1.bf16.msra.mxu1 %v3401_v11 }
 0x570   :  { %1447 = vmatprep.subr.bf16.mxu0 %v3406_v10  ;;  %1488 = vmatprep.subr.bf16.mxu1 %v3409_v2  ;;  %v4329_v2 = vld [vmem:[#allocation10 + $0x4] ss:$16 sps:$4 sm:$0xff]  }
 0x573   :  { %1448 = vmatpush1.bf16.msra.mxu0 %v3404_v13  ;;  %1489 = vmatpush1.bf16.msra.mxu1 %v3407_v25  ;;  %v4331_v13 = vld [vmem:[#allocation10 + $0xc] ss:$16 sps:$4 sm:$0xff]   ;;  %v4335_v25 = vld [vmem:[#allocation10 + $0x8] ss:$16 sps:$4 sm:$0xff]  }
 0x574   :  { %1449 = vmatprep.subr.bf16.mxu0 %v3412_v1  ;;  %1490 = vmatprep.subr.bf16.mxu1 %v3415_v5  ;;  %v4341_v1 = vld [vmem:[#allocation10 + $0x24] ss:$16 sps:$4 sm:$0xff]   ;;  %v4343_v5 = vld [vmem:[#allocation10 + $0x2c] ss:$16 sps:$4 sm:$0xff]  }
 0x577   :  { %1450 = vmatpush1.bf16.msra.mxu0 %v3410_v14  ;;  %1491 = vmatpush1.bf16.msra.mxu1 %v3413_v26  ;;  %v4345_v14 = vld [vmem:[#allocation10 + $0x20] ss:$16 sps:$4 sm:$0xff]   ;;  %v4347_v26 = vld [vmem:[#allocation10 + $0x28] ss:$16 sps:$4 sm:$0xff]  }
 0x578   :  { %1451 = vmatprep.subr.bf16.mxu0 %v3418_v27  ;;  %1492 = vmatprep.subr.bf16.mxu1 %v3421_v6  ;;  %v4353_v27 = vld [vmem:[#allocation10 + $0x44] ss:$16 sps:$4 sm:$0xff]   ;;  %v4355_v6 = vld [vmem:[#allocation10 + $0x4c] ss:$16 sps:$4 sm:$0xff]  }
 0x57b   :  { %1452 = vmatpush1.bf16.msra.mxu0 %v3416_v16  ;;  %1493 = vmatpush1.bf16.msra.mxu1 %v3419_v18  ;;  %v4357_v16 = vld [vmem:[#allocation10 + $0x40] ss:$16 sps:$4 sm:$0xff]   ;;  %v4359_v18 = vld [vmem:[#allocation10 + $0x48] ss:$16 sps:$4 sm:$0xff]  }
 0x57c   :  { %1453 = vmatprep.subr.bf16.mxu0 %v3424_v20  ;;  %1494 = vmatprep.subr.bf16.mxu1 %v3427_v17  ;;  %v4367_v20 = vld [vmem:[#allocation10 + $0x6c] ss:$16 sps:$4 sm:$0xff]   ;;  %v4371_v17 = vld [vmem:[#allocation10 + $0x68] ss:$16 sps:$4 sm:$0xff]  }
 0x57f   :  { %1454 = vmatpush1.bf16.msra.mxu0 %v3422_v0  ;;  %1495 = vmatpush1.bf16.msra.mxu1 %v3425_v7  ;;  %v4365_v0 = vld [vmem:[#allocation10 + $0x64] ss:$16 sps:$4 sm:$0xff]   ;;  %v4369_v7 = vld [vmem:[#allocation10 + $0x60] ss:$16 sps:$4 sm:$0xff]  }
 0x580   :  { %1455 = vmatprep.subr.bf16.mxu0 %v3430_v62  ;;  %1496 = vmatprep.subr.bf16.mxu1 %v3433_v28  ;;  %v4377_v62 = vld [vmem:[#allocation10 + $0x80] ss:$16 sps:$4 sm:$0xff]   ;;  %v4379_v28 = vld [vmem:[#allocation10 + $0x84] ss:$16 sps:$4 sm:$0xff]  }
 0x583   :  { %1456 = vmatpush1.bf16.msra.mxu0 %v3428_v61  ;;  %1497 = vmatpush1.bf16.msra.mxu1 %v3431_v59  ;;  %v4381_v61 = vld [vmem:[#allocation10 + $0x88] ss:$16 sps:$4 sm:$0xff]   ;;  %v4383_v59 = vld [vmem:[#allocation10 + $0x8c] ss:$16 sps:$4 sm:$0xff]  }
 0x584   :  { %1457 = vmatprep.subr.bf16.mxu0 %v3436_v63  ;;  %1498 = vmatprep.subr.bf16.mxu1 %v3439_v9  ;;  %v4385_v63 = vld [vmem:[#allocation10 + $0xa4] ss:$16 sps:$4 sm:$0xff]   ;;  %v4388_v9 = vld [vmem:[#allocation10 + $0xac] ss:$16 sps:$4 sm:$0xff]  }
 0x587   :  { %1458 = vmatpush1.bf16.msra.mxu0 %v3434_v15  ;;  %1499 = vmatpush1.bf16.msra.mxu1 %v3437_v19  ;;  %v4392_v15 = vld [vmem:[#allocation10 + $0xa0] ss:$16 sps:$4 sm:$0xff]   ;;  %v4396_v19 = vld [vmem:[#allocation10 + $0xa8] ss:$16 sps:$4 sm:$0xff]  }
 0x588   :  { %1459 = vmatprep.subr.bf16.mxu0 %v3442_v12  ;;  %1500 = vmatprep.subr.bf16.mxu1 %v3445_v29  ;;  %v4398_v12 = vld [vmem:[#allocation10 + $0xc4] ss:$16 sps:$4 sm:$0xff]   ;;  %v4401_v29 = vld [vmem:[#allocation10 + $0xcc] ss:$16 sps:$4 sm:$0xff]  }
 0x58b   :  { %1460 = vmatpush1.bf16.msra.mxu0 %v3440_v30  ;;  %1501 = vmatpush1.bf16.msra.mxu1 %v3443_v31  ;;  %v4404_v30 = vld [vmem:[#allocation10 + $0xc0] ss:$16 sps:$4 sm:$0xff]   ;;  %v4408_v31 = vld [vmem:[#allocation10 + $0xc8] ss:$16 sps:$4 sm:$0xff]  }
 0x58c   :  { %1771 = vmatprep.subr.bf16.mxu0 %v4329_v2  ;;  %1812 = vmatprep.subr.bf16.mxu1 %v4331_v13 }
 0x640   :  { %v1172_v32 = vpop.f32.mrb[20].mxu0  ;;  %v1213_v33 = vpop.f32.mrb[44].mxu1 }
 0x641   :  { %v1220_v35 = vadd.f32 %v1172_v32, %v4674_v34  ;;  %v1222_v37 = vadd.f32 %v1213_v33, %v4675_v36  ;;  %v1174_v38 = vpop.f32.mrb[21].mxu0  ;;  %v1215_v39 = vpop.f32.mrb[45].mxu1  ;;  %v4410_v32 = vld [vmem:[#allocation10 + $0xe4] ss:$16 sps:$4 sm:$0xff]   ;;  %v4413_v33 = vld [vmem:[#allocation10 + $0xec] ss:$16 sps:$4 sm:$0xff]  }
 0x642   :  { %v1221_v41 = vadd.f32 %v1174_v38, %v4676_v40  ;;  %v1223_v43 = vadd.f32 %v1215_v39, %v4677_v42  ;;  %v1176_v44 = vpop.f32.mrb[22].mxu0  ;;  %v1217_v45 = vpop.f32.mrb[46].mxu1  ;;  %v4416_v34 = vld [vmem:[#allocation10 + $0xe0] ss:$16 sps:$4 sm:$0xff]   ;;  %v314_v36 = vld [vmem:[%s4643_s6] sm:$0xf] }
 0x643   :  { %v3089_v46 = vmul.f32 -1.442695, %v1220_v35  ;;  %v1177_v47 = vpop.f32.mrb[23].mxu0  ;;  %v1218_v48 = vpop.f32.mrb[47].mxu1  ;;  %v4420_v35 = vld [vmem:[#allocation10 + $0xe8] ss:$16 sps:$4 sm:$0xff]  }
 0x644   :  { %v3090_v49 = vmul.f32 -1.442695, %v1221_v41  ;;  %v3091_v50 = vmul.f32 -1.442695, %v1223_v43  ;;  %v4679_v39 = vld [vmem:[#allocation18_spill] sm:$0xff] }
 0x645   :  { %3585 = vpow2.f32 %v3089_v46  ;;  %v323_v40 = vrot.slane %v314_v36, %v4679_v39 }
 0x646   :  { %3587 = vpow2.f32 %v3090_v49 }
 0x647   :  { %3589 = vpow2.f32 %v3091_v50 }
 0x648   :  { %3591 = vtanh.f32 %v1222_v37  ;;  %v4678_v37 = vld [vmem:[#allocation17_spill] sm:$0xff] }
 0x649   :  { %v319_v38 = vrot.slane %v314_v36, %v4678_v37 }
 0x64f   :  { %v3586_v51 = vpop.eup %3585 }
 0x650   :  { %v3588_v52 = vpop.eup %3587  ;;  %v1227_v53 = vadd.f32 1.0, %v3586_v51 }
 0x651   :  { %v1233_v54 = vadd.f32 1.0, %v3588_v52  ;;  %v3590_v55 = vpop.eup %3589 }
 0x652   :  { %3593 = vrcp.f32 %v1227_v53  ;;  %v3592_v56 = vpop.eup %3591  ;;  %v1240_v4 = vadd.f32 1.0, %v3590_v55  ;;  %v4680_v53 = vld [vmem:[#allocation21_spill] sm:$0xff] }
 0x653   :  { %3595 = vrcp.f32 %v1233_v54  ;;  %v331_v54 = vrot.slane %v314_v36, %v4680_v53 }
 0x654   :  { %3597 = vrcp.f32 %v1240_v4 }
 0x65c   :  { %v3594_v57 = vpop.eup %3593 }
 0x65d   :  { %v3596_v22 = vpop.eup %3595  ;;  %v1244_v3 = vmul.f32 %v3594_v57, %v3592_v56  ;;  %v4681_v56 = vld [vmem:[#allocation19_spill] sm:$0xff] }
 0x65e   :  { %v1243_v24 = vmul.f32 %v3596_v22, %v4314_v58  ;;  %v3598_v8 = vpop.eup %3597  ;;  %v4333_v58 = vld [vmem:[#allocation10] ss:$16 sps:$4 sm:$0xff]   ;;  %v327_v57 = vrot.slane %v314_v36, %v4681_v56 }
 0x660   :  { %v4324_v60 = vadd.f32 %v1244_v3, %v1243_v24 }
 0x662   :  { %3599 = vtanh.f32 %v4324_v60 }
 0x66c   :  { %v3600_v23 = vpop.eup %3599 }
 0x66d   :  { %v1247_v11 = vmul.f32 %v3600_v23, %v3598_v8 }
 0x66f   :  { %v1252_v10 = vpack.c.bf16 %v1247_v11, %v1247_v11 }
 0x671   :  { %1478 = vmatmul.mubr.bf16.vlgmr.msra.gmra.mrb[0].mxu0 %v1252_v10  ;;  %1519 = vmatmul.mubr.bf16.vlgmr.msra.gmra.mrb[24].mxu1 %v1252_v10 }
 0x672   :  { %1803 = vmatprep.mubr.bf16.mxu0 %v4670_v21  ;;  %1844 = vmatprep.mubr.bf16.mxu1 %v4670_v21 }
 0x673   :  { %1772 = vmatpush1.bf16.msra.mxu0 %v4333_v58  ;;  %1813 = vmatpush1.bf16.msra.mxu1 %v4335_v25 }
 0x674   :  { %1773 = vmatprep.subr.bf16.mxu0 %v4341_v1  ;;  %1814 = vmatprep.subr.bf16.mxu1 %v4343_v5 }
 0x677   :  { %1774 = vmatpush1.bf16.msra.mxu0 %v4345_v14  ;;  %1815 = vmatpush1.bf16.msra.mxu1 %v4347_v26 }
 0x678   :  { %1775 = vmatprep.subr.bf16.mxu0 %v4353_v27  ;;  %1816 = vmatprep.subr.bf16.mxu1 %v4355_v6 }
 0x67b   :  { %1776 = vmatpush1.bf16.msra.mxu0 %v4357_v16  ;;  %1817 = vmatpush1.bf16.msra.mxu1 %v4359_v18 }
 0x67c   :  { %1777 = vmatprep.subr.bf16.mxu0 %v4365_v0  ;;  %1818 = vmatprep.subr.bf16.mxu1 %v4367_v20 }
 0x67f   :  { %1778 = vmatpush1.bf16.msra.mxu0 %v4369_v7  ;;  %1819 = vmatpush1.bf16.msra.mxu1 %v4371_v17 }
 0x680   :  { %1779 = vmatprep.subr.bf16.mxu0 %v4379_v28  ;;  %1820 = vmatprep.subr.bf16.mxu1 %v4383_v59 }
 0x683   :  { %1780 = vmatpush1.bf16.msra.mxu0 %v4377_v62  ;;  %1821 = vmatpush1.bf16.msra.mxu1 %v4381_v61 }
 0x684   :  { %1781 = vmatprep.subr.bf16.mxu0 %v4385_v63  ;;  %1822 = vmatprep.subr.bf16.mxu1 %v4388_v9 }
 0x687   :  { %1782 = vmatpush1.bf16.msra.mxu0 %v4392_v15  ;;  %1823 = vmatpush1.bf16.msra.mxu1 %v4396_v19 }
 0x688   :  { %1783 = vmatprep.subr.bf16.mxu0 %v4398_v12  ;;  %1824 = vmatprep.subr.bf16.mxu1 %v4401_v29 }
 0x68b   :  { %1784 = vmatpush1.bf16.msra.mxu0 %v4404_v30  ;;  %1825 = vmatpush1.bf16.msra.mxu1 %v4408_v31 }
 0x68c   :  { %1785 = vmatprep.subr.bf16.mxu0 %v4410_v32  ;;  %1826 = vmatprep.subr.bf16.mxu1 %v4413_v33 }
 0x68f   :  { %1786 = vmatpush1.bf16.msra.mxu0 %v4416_v34  ;;  %1827 = vmatpush1.bf16.msra.mxu1 %v4420_v35 }
 0x690   :  { %2094 = vmatprep.subr.bf16.mxu0 %v4329_v2  ;;  %2135 = vmatprep.subr.bf16.mxu1 %v4331_v13 }
 0x744   :  { %v1479_v41 = vpop.f32.mrb[0].mxu0  ;;  %v1520_v42 = vpop.f32.mrb[24].mxu1 }
 0x745   :  { %v3318_v43 = vadd.f32 %v1479_v41, %v319_v38  ;;  %v1481_v44 = vpop.f32.mrb[1].mxu0  ;;  %v1522_v45 = vpop.f32.mrb[25].mxu1  ;;  %v3320_v3 = vadd.f32 %v1520_v42, %v327_v57 }
 0x746   :  { %v3319_v46 = vadd.f32 %v1481_v44, %v323_v40  ;;  %v1483_v47 = vpop.f32.mrb[2].mxu0  ;;  %v1524_v48 = vpop.f32.mrb[26].mxu1  ;;  %v3321_v55 = vadd.f32 %v1522_v45, %v331_v54 }
 0x747   :  { %v3124_v49 = vmul.f32 -1.442695, %v3318_v43  ;;  %v1484_v50 = vpop.f32.mrb[3].mxu0  ;;  %v1525_v51 = vpop.f32.mrb[27].mxu1 }
 0x748   :  { %v3125_v52 = vmul.f32 -1.442695, %v3319_v46  ;;  %v3126_v22 = vmul.f32 -1.442695, %v3321_v55 }
 0x749   :  { %3601 = vpow2.f32 %v3124_v49 }
 0x74a   :  { %3603 = vpow2.f32 %v3125_v52 }
 0x74b   :  { %3605 = vpow2.f32 %v3126_v22 }
 0x74c   :  { %3607 = vtanh.f32 %v3320_v3 }
 0x753   :  { %v3602_v4 = vpop.eup %3601 }
 0x754   :  { %v3604_v24 = vpop.eup %3603  ;;  %v1534_v8 = vadd.f32 1.0, %v3602_v4 }
 0x755   :  { %v1540_v23 = vadd.f32 1.0, %v3604_v24  ;;  %v3606_v11 = vpop.eup %3605 }
 0x756   :  { %3609 = vrcp.f32 %v1534_v8  ;;  %v3608_v10 = vpop.eup %3607  ;;  %v1547_v43 = vadd.f32 1.0, %v3606_v11 }
 0x757   :  { %3611 = vrcp.f32 %v1540_v23 }
 0x758   :  { %3613 = vrcp.f32 %v1547_v43 }
 0x760   :  { %v3610_v38 = vpop.eup %3609 }
 0x761   :  { %v3612_v40 = vpop.eup %3611  ;;  %v1551_v41 = vmul.f32 %v3610_v38, %v3608_v10 }
 0x762   :  { %v1550_v44 = vmul.f32 %v3612_v40, %v4324_v60  ;;  %v3614_v36 = vpop.eup %3613  ;;  %v1589_v60 = vld [vmem:[%s4645_s8] sm:$0xf] }
 0x763   :  { %v1594_v48 = vrot.slane %v1589_v60, %v4678_v37  ;;  %v1598_v49 = vrot.slane %v1589_v60, %v4679_v39  ;;  %v1606_v11 = vrot.slane %v1589_v60, %v4680_v53  ;;  %v1602_v38 = vrot.slane %v1589_v60, %v4681_v56 }
 0x764   :  { %v4435_v45 = vadd.f32 %v1551_v41, %v1550_v44 }
 0x766   :  { %3615 = vtanh.f32 %v4435_v45 }
 0x770   :  { %v3616_v42 = vpop.eup %3615 }
 0x771   :  { %v1554_v46 = vmul.f32 %v3616_v42, %v3614_v36 }
 0x773   :  { %v1555_v47 = vpack.c.bf16 %v1554_v46, %v1554_v46 }
 0x775   :  { %1556 = vst [vmem:[#allocation3] sm:$0xf] %v1555_v47  ;;  %1804 = vmatmul.mubr.bf16.vlgmr.msra.gmra.mrb[24].mxu0 %v1555_v47  ;;  %1845 = vmatmul.mubr.bf16.vlgmr.msra.gmra.mrb[48].mxu1 %v1555_v47 }
 0x776   :  { %2095 = vmatpush1.bf16.msra.mxu0 %v4333_v58  ;;  %2136 = vmatpush1.bf16.msra.mxu1 %v4335_v25 }
 0x777   :  { %2096 = vmatprep.subr.bf16.mxu0 %v4341_v1  ;;  %2137 = vmatprep.subr.bf16.mxu1 %v4343_v5 }
 0x778   :  { %2126 = vmatprep.mubr.bf16.mxu0 %v4670_v21  ;;  %2167 = vmatprep.mubr.bf16.mxu1 %v4670_v21 }
 0x77a   :  { %2097 = vmatpush1.bf16.msra.mxu0 %v4345_v14  ;;  %2138 = vmatpush1.bf16.msra.mxu1 %v4347_v26 }
 0x77b   :  { %2098 = vmatprep.subr.bf16.mxu0 %v4353_v27  ;;  %2139 = vmatprep.subr.bf16.mxu1 %v4355_v6 }
 0x77e   :  { %2099 = vmatpush1.bf16.msra.mxu0 %v4357_v16  ;;  %2140 = vmatpush1.bf16.msra.mxu1 %v4359_v18 }
 0x77f   :  { %2100 = vmatprep.subr.bf16.mxu0 %v4365_v0  ;;  %2141 = vmatprep.subr.bf16.mxu1 %v4367_v20 }
 0x782   :  { %2101 = vmatpush1.bf16.msra.mxu0 %v4369_v7  ;;  %2142 = vmatpush1.bf16.msra.mxu1 %v4371_v17 }
 0x783   :  { %2102 = vmatprep.subr.bf16.mxu0 %v4379_v28  ;;  %2143 = vmatprep.subr.bf16.mxu1 %v4383_v59 }
 0x786   :  { %2103 = vmatpush1.bf16.msra.mxu0 %v4377_v62  ;;  %2144 = vmatpush1.bf16.msra.mxu1 %v4381_v61 }
 0x787   :  { %2104 = vmatprep.subr.bf16.mxu0 %v4385_v63  ;;  %2145 = vmatprep.subr.bf16.mxu1 %v4388_v9 }
 0x78a   :  { %2105 = vmatpush1.bf16.msra.mxu0 %v4392_v15  ;;  %2146 = vmatpush1.bf16.msra.mxu1 %v4396_v19 }
 0x78b   :  { %2106 = vmatprep.subr.bf16.mxu0 %v4398_v12  ;;  %2147 = vmatprep.subr.bf16.mxu1 %v4401_v29 }
 0x78e   :  { %2107 = vmatpush1.bf16.msra.mxu0 %v4404_v30  ;;  %2148 = vmatpush1.bf16.msra.mxu1 %v4408_v31 }
 0x78f   :  { %2108 = vmatprep.subr.bf16.mxu0 %v4410_v32  ;;  %2149 = vmatprep.subr.bf16.mxu1 %v4413_v33 }
 0x792   :  { %2109 = vmatpush1.bf16.msra.mxu0 %v4416_v34  ;;  %2150 = vmatpush1.bf16.msra.mxu1 %v4420_v35 }
 0x793   :  { %2417 = vmatprep.subr.bf16.mxu0 %v4329_v2  ;;  %2458 = vmatprep.subr.bf16.mxu1 %v4331_v13 }
 0x848   :  { %v1805_v50 = vpop.f32.mrb[24].mxu0  ;;  %v1846_v51 = vpop.f32.mrb[48].mxu1 }
 0x849   :  { %v1806_v52 = vadd.f32 %v1805_v50, %v1594_v48  ;;  %v1807_v54 = vpop.f32.mrb[25].mxu0  ;;  %v1848_v55 = vpop.f32.mrb[49].mxu1  ;;  %v1847_v41 = vadd.f32 %v1846_v51, %v1602_v38 }
 0x84a   :  { %v1808_v57 = vadd.f32 %v1807_v54, %v1598_v49  ;;  %v1809_v22 = vpop.f32.mrb[26].mxu0  ;;  %v1850_v3 = vpop.f32.mrb[50].mxu1  ;;  %v1849_v10 = vadd.f32 %v1848_v55, %v1606_v11 }
 0x84b   :  { %v3159_v4 = vmul.f32 -1.442695, %v1806_v52  ;;  %v1810_v24 = vpop.f32.mrb[27].mxu0  ;;  %v1851_v8 = vpop.f32.mrb[51].mxu1 }
 0x84c   :  { %v3160_v23 = vmul.f32 -1.442695, %v1808_v57  ;;  %v3161_v40 = vmul.f32 -1.442695, %v1849_v10 }
 0x84d   :  { %3617 = vpow2.f32 %v3159_v4 }
 0x84e   :  { %3619 = vpow2.f32 %v3160_v23 }
 0x84f   :  { %3621 = vpow2.f32 %v3161_v40 }
 0x850   :  { %3623 = vtanh.f32 %v1847_v41 }
 0x857   :  { %v3618_v43 = vpop.eup %3617 }
 0x858   :  { %v3620_v44 = vpop.eup %3619  ;;  %v1856_v36 = vadd.f32 1.0, %v3618_v43 }
 0x859   :  { %v1862_v42 = vadd.f32 1.0, %v3620_v44  ;;  %v3622_v46 = vpop.eup %3621 }
 0x85a   :  { %3625 = vrcp.f32 %v1856_v36  ;;  %v3624_v47 = vpop.eup %3623  ;;  %v1869_v52 = vadd.f32 1.0, %v3622_v46 }
 0x85b   :  { %3627 = vrcp.f32 %v1862_v42 }
 0x85c   :  { %3629 = vrcp.f32 %v1869_v52 }
 0x864   :  { %v3626_v48 = vpop.eup %3625 }
 0x865   :  { %v3628_v49 = vpop.eup %3627  ;;  %v1873_v50 = vmul.f32 %v3626_v48, %v3624_v47 }
 0x866   :  { %v1872_v54 = vmul.f32 %v3628_v49, %v4435_v45  ;;  %v3630_v60 = vpop.eup %3629  ;;  %v1912_v45 = vld [vmem:[%s4645_s8] sm:$0xf] }
 0x867   :  { %v1917_v3 = vrot.slane %v1912_v45, %v4678_v37  ;;  %v1921_v4 = vrot.slane %v1912_v45, %v4679_v39  ;;  %v1929_v36 = vrot.slane %v1912_v45, %v4680_v53  ;;  %v1925_v46 = vrot.slane %v1912_v45, %v4681_v56 }
 0x868   :  { %v4480_v55 = vadd.f32 %v1873_v50, %v1872_v54 }
 0x86a   :  { %3631 = vtanh.f32 %v4480_v55 }
 0x874   :  { %v3632_v51 = vpop.eup %3631 }
 0x875   :  { %v1876_v57 = vmul.f32 %v3632_v51, %v3630_v60 }
 0x877   :  { %v1877_v22 = vpack.c.bf16 %v1876_v57, %v1876_v57 }
 0x879   :  { %1879 = vst [vmem:[#allocation3 + $0x4] sm:$0xf] %v1877_v22  ;;  %2127 = vmatmul.mubr.bf16.vlgmr.msra.gmra.mrb[28].mxu0 %v1877_v22  ;;  %2168 = vmatmul.mubr.bf16.vlgmr.msra.gmra.mrb[52].mxu1 %v1877_v22 }
 0x87a   :  { %2418 = vmatpush1.bf16.msra.mxu0 %v4333_v58  ;;  %2459 = vmatpush1.bf16.msra.mxu1 %v4335_v25 }
 0x87b   :  { %2419 = vmatprep.subr.bf16.mxu0 %v4341_v1  ;;  %2460 = vmatprep.subr.bf16.mxu1 %v4343_v5 }
 0x87c   :  { %2449 = vmatprep.mubr.bf16.mxu0 %v4670_v21  ;;  %2490 = vmatprep.mubr.bf16.mxu1 %v4670_v21 }
 0x87e   :  { %2420 = vmatpush1.bf16.msra.mxu0 %v4345_v14  ;;  %2461 = vmatpush1.bf16.msra.mxu1 %v4347_v26 }
 0x87f   :  { %2421 = vmatprep.subr.bf16.mxu0 %v4353_v27  ;;  %2462 = vmatprep.subr.bf16.mxu1 %v4355_v6 }
 0x882   :  { %2422 = vmatpush1.bf16.msra.mxu0 %v4357_v16  ;;  %2463 = vmatpush1.bf16.msra.mxu1 %v4359_v18 }
 0x883   :  { %2423 = vmatprep.subr.bf16.mxu0 %v4365_v0  ;;  %2464 = vmatprep.subr.bf16.mxu1 %v4367_v20 }
 0x886   :  { %2424 = vmatpush1.bf16.msra.mxu0 %v4369_v7  ;;  %2465 = vmatpush1.bf16.msra.mxu1 %v4371_v17 }
 0x887   :  { %2425 = vmatprep.subr.bf16.mxu0 %v4379_v28  ;;  %2466 = vmatprep.subr.bf16.mxu1 %v4383_v59 }
 0x88a   :  { %2426 = vmatpush1.bf16.msra.mxu0 %v4377_v62  ;;  %2467 = vmatpush1.bf16.msra.mxu1 %v4381_v61 }
 0x88b   :  { %2427 = vmatprep.subr.bf16.mxu0 %v4385_v63  ;;  %2468 = vmatprep.subr.bf16.mxu1 %v4388_v9 }
 0x88e   :  { %2428 = vmatpush1.bf16.msra.mxu0 %v4392_v15  ;;  %2469 = vmatpush1.bf16.msra.mxu1 %v4396_v19 }
 0x88f   :  { %2429 = vmatprep.subr.bf16.mxu0 %v4398_v12  ;;  %2470 = vmatprep.subr.bf16.mxu1 %v4401_v29 }
 0x892   :  { %2430 = vmatpush1.bf16.msra.mxu0 %v4404_v30  ;;  %2471 = vmatpush1.bf16.msra.mxu1 %v4408_v31 }
 0x893   :  { %2431 = vmatprep.subr.bf16.mxu0 %v4410_v32  ;;  %2472 = vmatprep.subr.bf16.mxu1 %v4413_v33 }
 0x896   :  { %2432 = vmatpush1.bf16.msra.mxu0 %v4416_v34  ;;  %2473 = vmatpush1.bf16.msra.mxu1 %v4420_v35 }
 0x897   :  { %2740 = vmatprep.subr.bf16.mxu0 %v4329_v2  ;;  %2781 = vmatprep.subr.bf16.mxu1 %v4331_v13 }
 0x94c   :  { %v2128_v24 = vpop.f32.mrb[28].mxu0  ;;  %v2169_v8 = vpop.f32.mrb[52].mxu1 }
 0x94d   :  { %v2129_v23 = vadd.f32 %v2128_v24, %v1917_v3  ;;  %v2130_v11 = vpop.f32.mrb[29].mxu0  ;;  %v2171_v10 = vpop.f32.mrb[53].mxu1  ;;  %v2170_v48 = vadd.f32 %v2169_v8, %v1925_v46  ;;  %v3498_v46 = vld [vmem:[%s4646_s9 + $0x20] sm:$0xff]  }
 0x94e   :  { %v2131_v38 = vadd.f32 %v2130_v11, %v1921_v4  ;;  %v2132_v40 = vpop.f32.mrb[30].mxu0  ;;  %v2173_v41 = vpop.f32.mrb[54].mxu1  ;;  %v2172_v42 = vadd.f32 %v2171_v10, %v1929_v36  ;;  %v3496_v36 = vld [vmem:[%s4646_s9 + $0x10] sm:$0xff]  }
 0x94f   :  { %v3194_v43 = vmul.f32 -1.442695, %v2129_v23  ;;  %v2133_v2 = vpop.f32.mrb[31].mxu0  ;;  %v2174_v44 = vpop.f32.mrb[55].mxu1 }
 0x950   :  { %v3195_v13 = vmul.f32 -1.442695, %v2131_v38  ;;  %v3196_v47 = vmul.f32 -1.442695, %v2172_v42  ;;  %v3494_v2 = vld [vmem:[%s4646_s9] sm:$0xff]   ;;  %v3497_v42 = vld [vmem:[%s4646_s9 + $0x18] sm:$0xff]  }
 0x951   :  { %3633 = vpow2.f32 %v3194_v43 }
 0x952   :  { %3635 = vpow2.f32 %v3195_v13  ;;  %v3495_v13 = vld [vmem:[%s4646_s9 + $0x8] sm:$0xff]  }
 0x953   :  { %3637 = vpow2.f32 %v3196_v47  ;;  %v3499_v47 = vld [vmem:[%s4646_s9 + $0x28] sm:$0xff]  }
 0x954   :  { %3639 = vtanh.f32 %v2170_v48  ;;  %v3500_v48 = vld [vmem:[%s4646_s9 + $0x30] sm:$0xff]  }
 0x95b   :  { %v3634_v49 = vpop.eup %3633 }
 0x95c   :  { %v3636_v50 = vpop.eup %3635  ;;  %v2179_v52 = vadd.f32 1.0, %v3634_v49  ;;  %v3501_v49 = vld [vmem:[%s4646_s9 + $0x38] sm:$0xff]  }
 0x95d   :  { %v2185_v54 = vadd.f32 1.0, %v3636_v50  ;;  %v3638_v60 = vpop.eup %3637  ;;  %v3502_v50 = vld [vmem:[#allocation3] sm:$0xff]  }
 0x95e   :  { %3641 = vrcp.f32 %v2179_v52  ;;  %v3640_v51 = vpop.eup %3639  ;;  %v2192_v4 = vadd.f32 1.0, %v3638_v60 }
 0x95f   :  { %3643 = vrcp.f32 %v2185_v54  ;;  %v2558_v54 = vld [vmem:[%s4645_s8] sm:$0xf] }
 0x960   :  { %3645 = vrcp.f32 %v2192_v4  ;;  %v2563_v60 = vrot.slane %v2558_v54, %v4678_v37 }
 0x968   :  { %v3642_v57 = vpop.eup %3641 }
 0x969   :  { %v3644_v22 = vpop.eup %3643  ;;  %v2196_v3 = vmul.f32 %v3642_v57, %v3640_v51  ;;  %v2567_v51 = vrot.slane %v2558_v54, %v4679_v39 }
 0x96a   :  { %v2195_v24 = vmul.f32 %v3644_v22, %v4480_v55  ;;  %v3646_v45 = vpop.eup %3645 }
 0x96c   :  { %v4525_v23 = vadd.f32 %v2196_v3, %v2195_v24 }
 0x96e   :  { %3647 = vtanh.f32 %v4525_v23 }
 0x978   :  { %v3648_v8 = vpop.eup %3647 }
 0x979   :  { %v2199_v11 = vmul.f32 %v3648_v8, %v3646_v45 }
 0x97b   :  { %v2200_v10 = vpack.c.bf16 %v2199_v11, %v2199_v11 }
 0x97d   :  { %2202 = vst [vmem:[#allocation3 + $0x8] sm:$0xf] %v2200_v10  ;;  %2450 = vmatmul.mubr.bf16.vlgmr.msra.gmra.mrb[32].mxu0 %v2200_v10  ;;  %2491 = vmatmul.mubr.bf16.vlgmr.msra.gmra.mrb[56].mxu1 %v2200_v10 }
 0x97e   :  { %2741 = vmatpush1.bf16.msra.mxu0 %v4333_v58  ;;  %2782 = vmatpush1.bf16.msra.mxu1 %v4335_v25  ;;  %v2235_v58 = vld [vmem:[%s4645_s8] sm:$0xf] }
 0x97f   :  { %2742 = vmatprep.subr.bf16.mxu0 %v4341_v1  ;;  %2783 = vmatprep.subr.bf16.mxu1 %v4343_v5  ;;  %v2240_v25 = vrot.slane %v2235_v58, %v4678_v37  ;;  %v2244_v1 = vrot.slane %v2235_v58, %v4679_v39  ;;  %v2571_v37 = vrot.slane %v2558_v54, %v4681_v56 }
 0x980   :  { %2772 = vmatprep.mubr.bf16.mxu0 %v4670_v21  ;;  %2813 = vmatprep.mubr.bf16.mxu1 %v4670_v21  ;;  %v3806_v21 = vmov 0.0  }
 0x982   :  { %2743 = vmatpush1.bf16.msra.mxu0 %v4345_v14  ;;  %2784 = vmatpush1.bf16.msra.mxu1 %v4347_v26 }
 0x983   :  { %2744 = vmatprep.subr.bf16.mxu0 %v4353_v27  ;;  %2785 = vmatprep.subr.bf16.mxu1 %v4355_v6 }
 0x986   :  { %2745 = vmatpush1.bf16.msra.mxu0 %v4357_v16  ;;  %2786 = vmatpush1.bf16.msra.mxu1 %v4359_v18 }
 0x987   :  { %2746 = vmatprep.subr.bf16.mxu0 %v4365_v0  ;;  %2787 = vmatprep.subr.bf16.mxu1 %v4367_v20 }
 0x98a   :  { %2747 = vmatpush1.bf16.msra.mxu0 %v4369_v7  ;;  %2788 = vmatpush1.bf16.msra.mxu1 %v4371_v17 }
 0x98b   :  { %2748 = vmatprep.subr.bf16.mxu0 %v4379_v28  ;;  %2789 = vmatprep.subr.bf16.mxu1 %v4383_v59  ;;  %v2252_v28 = vrot.slane %v2235_v58, %v4680_v53  ;;  %v2248_v59 = vrot.slane %v2235_v58, %v4681_v56  ;;  %v3267_v56 = vld [vmem:[%s4647_s10] ss:$0 sm:$0xff]  ;;  %s3808_s10 = smov [#allocation12]  }
 0x98c   :  { %s3007_s23 = sshll.u32 %s3808_s10, 4  ;;  %s3008_s23 = int_to_ptr.vmem [resolvable:$true] %s3007_s23 }
 0x98d   :  { %s3769_s4 = scalar_lea.vmem %s3008_s23, 640  ;;  %p3774_p5 = scmp.lt.s32.totalorder %s3008_s23, %s3008_s23 }
 0x98e   :  { %2749 = vmatpush1.bf16.msra.mxu0 %v4377_v62  ;;  %2790 = vmatpush1.bf16.msra.mxu1 %v4381_v61  ;;  %p3770_p4 = scmp.ne.s32.totalorder %s3008_s23, %s3769_s4  ;;  %p3775_p6 = scmp.lt.s32.totalorder %s3769_s4, %s3769_s4 }
 0x98f   :  { %2750 = vmatprep.subr.bf16.mxu0 %v4385_v63  ;;  %2791 = vmatprep.subr.bf16.mxu1 %v4388_v9 }
 0x990   :  { %p3776_p7 = por %p3775_p6, %p3774_p5 }
 0x992   :  { %2751 = vmatpush1.bf16.msra.mxu0 %v4392_v15  ;;  %2792 = vmatpush1.bf16.msra.mxu1 %v4396_v19  ;;  %p3777_p8 = pnand %p3776_p7, %p3770_p4 }
 0x993   :  { %2752 = vmatprep.subr.bf16.mxu0 %v4398_v12  ;;  %2793 = vmatprep.subr.bf16.mxu1 %v4401_v29 }
 0x996   :  { %2753 = vmatpush1.bf16.msra.mxu0 %v4404_v30  ;;  %2794 = vmatpush1.bf16.msra.mxu1 %v4408_v31 }
 0x997   :  { %2754 = vmatprep.subr.bf16.mxu0 %v4410_v32  ;;  %2795 = vmatprep.subr.bf16.mxu1 %v4413_v33 }
 0x99a   :  { %2755 = vmatpush1.bf16.msra.mxu0 %v4416_v34  ;;  %2796 = vmatpush1.bf16.msra.mxu1 %v4420_v35 }
 0x99b   :  { %3290 = vmatprep.subr.bf16.mxu0 %v3806_v21 }
 0xa50   :  { %v2451_v5 = vpop.f32.mrb[32].mxu0  ;;  %v2492_v14 = vpop.f32.mrb[56].mxu1 }
 0xa51   :  { %v2452_v26 = vadd.f32 %v2451_v5, %v2240_v25  ;;  %v2453_v27 = vpop.f32.mrb[33].mxu0  ;;  %v2494_v6 = vpop.f32.mrb[57].mxu1  ;;  %v2493_v9 = vadd.f32 %v2492_v14, %v2248_v59  ;;  %v2575_v25 = vrot.slane %v2558_v54, %v4680_v53 }
 0xa52   :  { %v2454_v16 = vadd.f32 %v2453_v27, %v2244_v1  ;;  %v2455_v18 = vpop.f32.mrb[34].mxu0  ;;  %v2496_v0 = vpop.f32.mrb[58].mxu1  ;;  %v2495_v61 = vadd.f32 %v2494_v6, %v2252_v28 }
 0xa53   :  { %v3229_v20 = vmul.f32 -1.442695, %v2452_v26  ;;  %v2456_v7 = vpop.f32.mrb[35].mxu0  ;;  %v2497_v17 = vpop.f32.mrb[59].mxu1 }
 0xa54   :  { %v3230_v62 = vmul.f32 -1.442695, %v2454_v16  ;;  %v3231_v63 = vmul.f32 -1.442695, %v2495_v61 }
 0xa55   :  { %3649 = vpow2.f32 %v3229_v20 }
 0xa56   :  { %3651 = vpow2.f32 %v3230_v62 }
 0xa57   :  { %3653 = vpow2.f32 %v3231_v63 }
 0xa58   :  { %3655 = vtanh.f32 %v2493_v9 }
 0xa5f   :  { %v3650_v15 = vpop.eup %3649 }
 0xa60   :  { %v3652_v19 = vpop.eup %3651  ;;  %v2502_v12 = vadd.f32 1.0, %v3650_v15 }
 0xa61   :  { %v2508_v29 = vadd.f32 1.0, %v3652_v19  ;;  %v3654_v30 = vpop.eup %3653 }
 0xa62   :  { %3657 = vrcp.f32 %v2502_v12  ;;  %v3656_v31 = vpop.eup %3655  ;;  %v2515_v35 = vadd.f32 1.0, %v3654_v30 }
 0xa63   :  { %3659 = vrcp.f32 %v2508_v29 }
 0xa64   :  { %3661 = vrcp.f32 %v2515_v35 }
 0xa6c   :  { %v3658_v32 = vpop.eup %3657 }
 0xa6d   :  { %v3660_v33 = vpop.eup %3659  ;;  %v2519_v34 = vmul.f32 %v3658_v32, %v3656_v31 }
 0xa6e   :  { %v2518_v55 = vmul.f32 %v3660_v33, %v4525_v23  ;;  %v3662_v40 = vpop.eup %3661 }
 0xa70   :  { %v4569_v38 = vadd.f32 %v2519_v34, %v2518_v55 }
 0xa72   :  { %3663 = vtanh.f32 %v4569_v38 }
 0xa7c   :  { %v3664_v41 = vpop.eup %3663 }
 0xa7d   :  { %v2522_v43 = vmul.f32 %v3664_v41, %v3662_v40 }
 0xa7f   :  { %v2523_v44 = vpack.c.bf16 %v2522_v43, %v2522_v43 }
 0xa81   :  { %2525 = vst [vmem:[#allocation3 + $0xc] sm:$0xf] %v2523_v44  ;;  %2773 = vmatmul.mubr.bf16.vlgmr.msra.gmra.mrb[36].mxu0 %v2523_v44  ;;  %2814 = vmatmul.mubr.bf16.vlgmr.msra.gmra.mrb[60].mxu1 %v2523_v44 }
 0xa82   :  { %3291 = vmatpush3.bf16.msra.mxu0 %v3494_v2  ;;  %3306 = vmatprep.mubr.msk.bf16.mxu0 %vm3807_vm2, %v3806_v21 }
 0xa83   :  { %3292 = vmatprep.subr.bf16.mxu0 %v3806_v21 }
 0xa86   :  { %3293 = vmatpush3.bf16.msra.mxu0 %v3495_v13 }
 0xa87   :  { %3294 = vmatprep.subr.bf16.mxu0 %v3806_v21 }
 0xa88   :  { %v3503_v52 = vld [vmem:[#allocation3 + $0x8] sm:$0xff]  }
 0xa8a   :  { %3295 = vmatpush3.bf16.msra.mxu0 %v3496_v36 }
 0xa8b   :  { %3296 = vmatprep.subr.bf16.mxu0 %v3806_v21 }
 0xa8e   :  { %3297 = vmatpush3.bf16.msra.mxu0 %v3497_v42 }
 0xa8f   :  { %3298 = vmatprep.subr.bf16.mxu0 %v3806_v21 }
 0xa92   :  { %3299 = vmatpush3.bf16.msra.mxu0 %v3498_v46 }
 0xa93   :  { %3300 = vmatprep.subr.bf16.mxu0 %v3806_v21 }
 0xa96   :  { %3301 = vmatpush3.bf16.msra.mxu0 %v3499_v47 }
 0xa97   :  { %3302 = vmatprep.subr.bf16.mxu0 %v3806_v21 }
 0xa9a   :  { %3303 = vmatpush3.bf16.msra.mxu0 %v3500_v48 }
 0xa9b   :  { %3304 = vmatprep.subr.bf16.mxu0 %v3806_v21 }
 0xa9e   :  { %3305 = vmatpush3.bf16.msra.mxu0 %v3501_v49 }
 0xaa1   :  { %3307 = vmatmul.mubr.bf16.vlgmr.msra.gmra.mrb[40].mxu0 %v3502_v50 }
 0xaa2   :  { %3310 = vmatprep.mubr.msk.bf16.mxu0 %vm3807_vm2, %v3806_v21 }
 0xaa9   :  { %3311 = vmatmul.mubr.bf16.gmra.mrb[44].mxu0 %v3503_v52 }
 0xaaa   :  { %3314 = vmatprep.mubr.msk.bf16.mxu0 %vm3807_vm2, %v3806_v21 }
 0xb54   :  { %v2774_v57 = vpop.f32.mrb[36].mxu0  ;;  %v2815_v22 = vpop.f32.mrb[60].mxu1 }
 0xb55   :  { %v2775_v3 = vadd.f32 %v2774_v57, %v2563_v60  ;;  %v2776_v4 = vpop.f32.mrb[37].mxu0  ;;  %v2817_v24 = vpop.f32.mrb[61].mxu1  ;;  %v2816_v5 = vadd.f32 %v2815_v22, %v2571_v37 }
 0xb56   :  { %v2777_v23 = vadd.f32 %v2776_v4, %v2567_v51  ;;  %v2778_v45 = vpop.f32.mrb[38].mxu0  ;;  %v2819_v8 = vpop.f32.mrb[62].mxu1  ;;  %v2818_v1 = vadd.f32 %v2817_v24, %v2575_v25 }
 0xb57   :  { %v3264_v11 = vmul.f32 -1.442695, %v2775_v3  ;;  %v2779_v10 = vpop.f32.mrb[39].mxu0  ;;  %v2820_v58 = vpop.f32.mrb[63].mxu1 }
 0xb58   :  { %v3265_v21 = vmul.f32 -1.442695, %v2777_v23  ;;  %v3266_v39 = vmul.f32 -1.442695, %v2818_v1 }
 0xb59   :  { %3665 = vpow2.f32 %v3264_v11 }
 0xb5a   :  { %3667 = vpow2.f32 %v3265_v21 }
 0xb5b   :  { %3669 = vpow2.f32 %v3266_v39 }
 0xb5c   :  { %3671 = vtanh.f32 %v2816_v5 }
 0xb63   :  { %v3666_v14 = vpop.eup %3665 }
 0xb64   :  { %v3668_v26 = vpop.eup %3667  ;;  %v2825_v27 = vadd.f32 1.0, %v3666_v14 }
 0xb65   :  { %v2831_v6 = vadd.f32 1.0, %v3668_v26  ;;  %v3670_v16 = vpop.eup %3669 }
 0xb66   :  { %3673 = vrcp.f32 %v2825_v27  ;;  %v3672_v18 = vpop.eup %3671  ;;  %v2838_v7 = vadd.f32 1.0, %v3670_v16 }
 0xb67   :  { %3675 = vrcp.f32 %v2831_v6 }
 0xb68   :  { %3677 = vrcp.f32 %v2838_v7 }
 0xb70   :  { %v3674_v0 = vpop.eup %3673 }
 0xb71   :  { %v3676_v20 = vpop.eup %3675  ;;  %v2842_v53 = vmul.f32 %v3674_v0, %v3672_v18 }
 0xb72   :  { %v2841_v17 = vmul.f32 %v3676_v20, %v4569_v38  ;;  %v3678_v31 = vpop.eup %3677 }
 0xb74   :  { %v2843_v62 = vadd.f32 %v2842_v53, %v2841_v17  ;;  %v2975_v28 = vpop.f32.mrb[40].mxu0 }
 0xb75   :  { %v2976_v61 = vadd.f32 %v3267_v56, %v2975_v28  ;;  %v3308_v59 = vpop.f32.mrb[41].mxu0 }
 0xb76   :  { %3679 = vtanh.f32 %v2843_v62  ;;  %v2978_v63 = vpop.f32.mrb[42].mxu0 }
 0xb77   :  { %2997 = vst.msk [vmem:[#allocation12] sm:$0xff] %vm136_vm1, %v2976_v61  ;;  %v2979_v9 = vadd.f32 %v3267_v56, %v2978_v63  ;;  %v3309_v15 = vpop.f32.mrb[43].mxu0 }
 0xb79   :  { %2998 = vst.msk [vmem:[#allocation12 + $0x8] sm:$0xff] %vm136_vm1, %v2979_v9 }
 0xb7c   :  { %v2983_v19 = vpop.f32.mrb[44].mxu0 }
 0xb7d   :  { %v2984_v12 = vadd.f32 %v3267_v56, %v2983_v19  ;;  %v3312_v29 = vpop.f32.mrb[45].mxu0 }
 0xb7e   :  { %v2986_v30 = vpop.f32.mrb[46].mxu0 }
 0xb7f   :  { %2999 = vst.msk [vmem:[#allocation12 + $0x10] sm:$0xff] %vm136_vm1, %v2984_v12  ;;  %v2987_v32 = vadd.f32 %v3267_v56, %v2986_v30  ;;  %v3313_v33 = vpop.f32.mrb[47].mxu0 }
 0xb80   :  { %v3680_v34 = vpop.eup %3679 }
 0xb81   :  { %v2845_v35 = vmul.f32 %v3680_v34, %v3678_v31  ;;  %3000 = vst.msk [vmem:[#allocation12 + $0x18] sm:$0xff] %vm136_vm1, %v2987_v32 }
 0xb83   :  { %v2846_v55 = vpack.c.bf16 %v2845_v35, %v2845_v35 }
 0xb85   :  { %2848 = vst [vmem:[#allocation3 + $0x10] sm:$0xf] %v2846_v55 }
 0xb8c   :  { %v3504_v38 = vld [vmem:[#allocation3 + $0x10] ss:$0 sps:$4 sm:$0xff]  }
 0xb8d   :  { %3315 = vmatmul.mubr.bf16.gmra.mrb[48].mxu0 %v3504_v38 }
 0xc60   :  { %v2991_v40 = vpop.f32.mrb[48].mxu0 }
 0xc61   :  { %v2992_v41 = vadd.f32 %v3267_v56, %v2991_v40  ;;  %v3316_v43 = vpop.f32.mrb[49].mxu0 }
 0xc62   :  { %v2994_v2 = vpop.f32.mrb[50].mxu0 }
 0xc63   :  { %3001 = vst.msk [vmem:[#allocation12 + $0x20] sm:$0xff] %vm136_vm1, %v2992_v41  ;;  %v3317_v44 = vpop.f32.mrb[51].mxu0 }
 0xc64   :  { %3780 = shalt.err (!%p3777_p8)
}
 0xc65   :  { %s3781_s26 = scalar_lea.hbm %s4648_s11, 640 }
 0xc66   :  { %p3782_p9 = scmp.ne.s32.totalorder %s4648_s11, %s3781_s26  ;;  %p3785_p10 = scmp.lt.u32.totalorder %s3781_s26, %s4648_s11 }
 0xc68   :  { %p3787_p11 = pnand %p3785_p10, %p3782_p9 }
 0xc6a   :  { %3790 = shalt.err (!%p3787_p11)
}
 0xc6b   :  { %s3809_s30 = smov 128   ;;  %s3810_s12 = smov 8  }
 0xc6c   :  { %3013 = dma.vmem_to_hbm [thread:$0]  %s3008_s23, 640, %s4648_s11, [#allocation6], %s3809_s30, %s3809_s30, %s3810_s12  }
 0xc6d   :  { %3797 = dma.done.wait [#allocation6], 640  }
 0xc6e   :  { %3798 = vsyncadd [#allocation6], 4294966656 }
 0xc6f   :  { %3017 = vsyncpa [#allocation5], 1 }
 0xc70   :  { %3018 = vsyncpa [#allocation8], 1 }
 0xc71   :  { %3019 = vsyncpa [#allocation11], 1 }
 0xc72   :  { %3020 = vsyncpa [#allocation6], 1 }

</bundles_post_ra>
